<compile_context>
chip_gen: v5e
topology: v5e:2x2
jax: 0.10.0
libtpu: 0.0.40
codegen_flags: <defaults>
</compile_context>

<pallas_src>
import math
from functools import partial

import jax
import jax.numpy as jnp
from jax.experimental import pallas as pl
from jax.experimental.pallas import tpu as pltpu

NEG_INF = -1e30  # finite sentinel: fully padded rows give uniform attn, not NaN


# ----------------------------- fused attention kernel -----------------------------
def _fused_attn_kernel(n_head, head_dim, x_ref, wqkv_ref, wproj_ref, m_ref, o_ref):
    C = n_head * head_dim

    x = x_ref[0].astype(jnp.bfloat16)                                  # (T, C)
    # Fused QKV projection: one (T,C)x(C,3C) MXU matmul, f32 accumulation.
    # 1/sqrt(head_dim) is pre-folded into the Q columns of W_qkv.
    qkv = jnp.dot(x, wqkv_ref[...],
                  preferred_element_type=jnp.float32)                  # (T, 3C) f32
    qkv = qkv.astype(jnp.bfloat16)                                     # single cast

    # Additive key-padding bias, hoisted out of the head loop.
    key_valid = m_ref[0] != 0                                          # (1, T)
    bias = jnp.where(key_valid, 0.0, NEG_INF).astype(jnp.float32)      # (1, T)

    ys = []
    # Static unrolled loop over heads; all intermediates stay in vregs/VMEM.
    for h in range(n_head):
        lo = h * head_dim
        hi = lo + head_dim
        qh = qkv[:, lo:hi]                                             # (T, hd) bf16
        kh = qkv[:, C + lo:C + hi]                                     # (T, hd) bf16
        vh = qkv[:, 2 * C + lo:2 * C + hi]                             # (T, hd) bf16

        s = jnp.einsum("td,sd->ts", qh, kh,
                       preferred_element_type=jnp.float32)             # (T, T) f32
        s = s + bias                                                   # mask as add
        s = s - jnp.max(s, axis=-1, keepdims=True)
        p = jnp.exp(s)                                                 # f32 (portable)
        denom = jnp.sum(p, axis=-1, keepdims=True)                     # (T, 1) f32

        # Deferred normalization: un-normalized PV matmul, scale the small tile.
        yh = jnp.dot(p.astype(jnp.bfloat16), vh,
                     preferred_element_type=jnp.float32)               # (T, hd) f32
        yh = yh * pl.reciprocal(denom, approx=True)                    # EUP divide
        ys.append(yh.astype(jnp.bfloat16))

    # Single full-depth (K = C) output projection instead of n_head K=hd partials.
    y = jnp.concatenate(ys, axis=-1)                                   # (T, C) bf16
    # resid_dropout / attn_dropout are identity in eval mode.
    o_ref[0] = jnp.dot(y, wproj_ref[...], preferred_element_type=jnp.float32)


# ----------------------------- wrappers -----------------------------
def prepare_weights(w_qkv, w_proj, *, n_head):
    """One-time weight prep: fold softmax scale into Q columns, cast to bf16.

    Hoisted out of the per-call path so each layer call does not pay an extra
    HBM read/write pass over the weights before the kernel starts.
    """
    C = w_proj.shape[0]
    head_dim = C // n_head
    scale = 1.0 / math.sqrt(head_dim)
    w_qkv = w_qkv.at[:, :C].multiply(scale)          # fold 1/sqrt(hd) into Q proj
    return w_qkv.astype(jnp.bfloat16), w_proj.astype(jnp.bfloat16)


def lightning_attention(x, w_qkv_bf16, w_proj_bf16, mask=None, *, n_head):
    """Fused OptimizedLightningAttention.forward (eval). Expects prepared weights."""
    B, T, C = x.shape
    assert C % n_head == 0
    head_dim = C // n_head

    if mask is None:
        mask = jnp.ones((B, T), jnp.int32)
    mask3 = mask.reshape(B, 1, T).astype(jnp.int32)

    kernel = partial(_fused_attn_kernel, n_head, head_dim)
    return pl.pallas_call(
        kernel,
        out_shape=jax.ShapeDtypeStruct((B, T, C), jnp.float32),
        grid=(B,),
        in_specs=[
            pl.BlockSpec((1, T, C), lambda b: (b, 0, 0)),        # x (per batch row)
            pl.BlockSpec((C, 3 * C), lambda b: (0, 0)),          # W_qkv (resident)
            pl.BlockSpec((C, C), lambda b: (0, 0)),              # W_proj (resident)
            pl.BlockSpec((1, 1, T), lambda b: (b, 0, 0)),        # key-padding mask
        ],
        out_specs=pl.BlockSpec((1, T, C), lambda b: (b, 0, 0)),
        compiler_params=pltpu.CompilerParams(
            dimension_semantics=("parallel",)),
    )(x, w_qkv_bf16, w_proj_bf16, mask3)


# ----------------------------- pure-JAX reference (f32) -----------------------------
def ref_attention(x, w_qkv, w_proj, mask, n_head):
    B, T, C = x.shape
    hd = C // n_head
    qkv = x @ w_qkv
    q, k, v = jnp.split(qkv, 3, axis=-1)

    def heads(z):
        return z.reshape(B, T, n_head, hd).transpose(0, 2, 1, 3)

    q, k, v = heads(q), heads(k), heads(v)
    s = jnp.einsum("bhtd,bhsd->bhts", q, k) / math.sqrt(hd)
    s = jnp.where(mask[:, None, None, :] == 0, -jnp.inf, s)
    p = jax.nn.softmax(s, axis=-1)
    y = jnp.einsum("bhts,bhsd->bhtd", p, v)
    y = y.transpose(0, 2, 1, 3).reshape(B, T, C)
    return y @ w_proj


# ----------------------------- main -----------------------------
if __name__ == "__main__":
    key = jax.random.PRNGKey(0)
    k1, k2, k3 = jax.random.split(key, 3)

    # Small but lane-dense shapes (last dims multiples of 128).
    B, T, C, n_head = 2, 128, 128, 4
    init_scale = 0.02

    x = jax.random.normal(k1, (B, T, C), jnp.float32)
    w_qkv = init_scale * jax.random.normal(k2, (C, 3 * C), jnp.float32)
    w_proj = init_scale * jax.random.normal(k3, (C, C), jnp.float32)

    # Key-padding mask: second sequence has its last 32 positions padded.
    mask = jnp.ones((B, T), jnp.int32)
    mask = mask.at[1, T - 32:].set(0)

    # One-time weight prep (scale fold + bf16 cast), outside the call path.
    w_qkv_bf16, w_proj_bf16 = prepare_weights(w_qkv, w_proj, n_head=n_head)

    out = lightning_attention(x, w_qkv_bf16, w_proj_bf16, mask, n_head=n_head)
    out = jax.block_until_ready(out)

    ref = ref_attention(x, w_qkv, w_proj, mask, n_head)

    assert out.shape == (B, T, C)
    assert bool(jnp.all(jnp.isfinite(out)))
    err = float(jnp.max(jnp.abs(out - ref)))
    assert err < 1e-2, f"max abs err vs f32 reference: {err}"
    print("KERNEL_OK")
</pallas_src>

<mosaic_0001>
module attributes {stable_mosaic.version = 11 : i64} {
  func.func @_fused_attn_kernel(%arg0: i32, %arg1: memref<1x128x128xf32, #tpu.memory_space<vmem>>, %arg2: memref<128x384xbf16, #tpu.memory_space<vmem>>, %arg3: memref<128x128xbf16, #tpu.memory_space<vmem>>, %arg4: memref<1x1x128xi32, #tpu.memory_space<vmem>>, %arg5: memref<1x128x128xf32, #tpu.memory_space<vmem>>) attributes {dimension_semantics = [#tpu.dimension_semantics<parallel>], iteration_bounds = array<i64: 2>, scalar_prefetch = 0 : i64, scratch_operands = 0 : i64, tpu.core_type = #tpu.core_type<tc>, window_params = [{transform_indices = @transform_0, window_bounds = array<i64: 1, 128, 128>}, {pipeline_mode = #tpu.pipeline_mode<synchronous>, transform_indices = @transform_1, window_bounds = array<i64: 128, 384>}, {pipeline_mode = #tpu.pipeline_mode<synchronous>, transform_indices = @transform_2, window_bounds = array<i64: 128, 128>}, {transform_indices = @transform_3, window_bounds = array<i64: 1, 1, 128>}, {transform_indices = @transform_4, window_bounds = array<i64: 1, 128, 128>}]} {
    %c0 = arith.constant 0 : index
    %c0_0 = arith.constant 0 : index
    %c0_1 = arith.constant 0 : index
    %0 = vector.load %arg1[%c0, %c0_0, %c0_1] : memref<1x128x128xf32, #tpu.memory_space<vmem>>, vector<1x128x128xf32>
    %1 = vector.shape_cast %0 : vector<1x128x128xf32> to vector<128x128xf32>
    %2 = arith.truncf %1 : vector<128x128xf32> to vector<128x128xbf16>
    %c0_2 = arith.constant 0 : index
    %c0_3 = arith.constant 0 : index
    %3 = vector.load %arg2[%c0_2, %c0_3] : memref<128x384xbf16, #tpu.memory_space<vmem>>, vector<128x384xbf16>
    %cst = arith.constant dense<0.000000e+00> : vector<128x384xf32>
    %4 = tpu.matmul %2, %3, %cst {dimension_numbers = #tpu.dot_dimension_numbers<[1], [0], [0], [1], [0, 0, 1, 1], [], []>} : vector<128x128xbf16>, vector<128x384xbf16>, vector<128x384xf32> -> vector<128x384xf32>
    %5 = arith.truncf %4 : vector<128x384xf32> to vector<128x384xbf16>
    %c0_4 = arith.constant 0 : index
    %c0_5 = arith.constant 0 : index
    %c0_6 = arith.constant 0 : index
    %6 = vector.load %arg4[%c0_4, %c0_5, %c0_6] : memref<1x1x128xi32, #tpu.memory_space<vmem>>, vector<1x1x128xi32>
    %7 = vector.shape_cast %6 : vector<1x1x128xi32> to vector<1x128xi32>
    %c0_i32 = arith.constant 0 : i32
    %8 = vector.broadcast %c0_i32 : i32 to vector<1x128xi32>
    %9 = arith.cmpi ne, %7, %8 : vector<1x128xi32>
    %cst_7 = arith.constant 0.000000e+00 : f32
    %cst_8 = arith.constant -1.000000e+30 : f32
    %10 = vector.broadcast %cst_7 : f32 to vector<1x128xf32>
    %11 = vector.broadcast %cst_8 : f32 to vector<1x128xf32>
    %12 = arith.select %9, %10, %11 : vector<1x128xi1>, vector<1x128xf32>
    %13 = vector.extract_strided_slice %5 {offsets = [0, 0], sizes = [128, 32], strides = [1, 1]} : vector<128x384xbf16> to vector<128x32xbf16>
    %14 = vector.extract_strided_slice %5 {offsets = [0, 128], sizes = [128, 32], strides = [1, 1]} : vector<128x384xbf16> to vector<128x32xbf16>
    %15 = vector.extract_strided_slice %5 {offsets = [0, 256], sizes = [128, 32], strides = [1, 1]} : vector<128x384xbf16> to vector<128x32xbf16>
    "tpu.trace_start"() <{level = 10 : i32, message = "td,sd->ts"}> : () -> ()
    %cst_9 = arith.constant dense<0.000000e+00> : vector<128x128xf32>
    %16 = tpu.matmul %13, %14, %cst_9 {dimension_numbers = #tpu.dot_dimension_numbers<[1], [1], [0], [0], [0, 0, 1, 0], [], []>} : vector<128x32xbf16>, vector<128x32xbf16>, vector<128x128xf32> -> vector<128x128xf32>
    "tpu.trace_stop"() : () -> ()
    %17 = vector.broadcast %12 : vector<1x128xf32> to vector<128x128xf32>
    %18 = arith.addf %16, %17 : vector<128x128xf32>
    %cst_10 = arith.constant dense<0xFF800000> : vector<128xf32>
    %19 = vector.multi_reduction <maximumf>, %18, %cst_10 [1] : vector<128x128xf32> to vector<128xf32>
    %20 = vector.shape_cast %19 : vector<128xf32> to vector<128x1xf32>
    %21 = vector.broadcast %20 : vector<128x1xf32> to vector<128x128xf32>
    %22 = arith.subf %18, %21 : vector<128x128xf32>
    %23 = math.exp %22 : vector<128x128xf32>
    %cst_11 = arith.constant dense<0.000000e+00> : vector<128xf32>
    %24 = vector.multi_reduction <add>, %23, %cst_11 [1] : vector<128x128xf32> to vector<128xf32>
    %25 = vector.shape_cast %24 : vector<128xf32> to vector<128x1xf32>
    %26 = arith.truncf %23 : vector<128x128xf32> to vector<128x128xbf16>
    %cst_12 = arith.constant dense<0.000000e+00> : vector<128x32xf32>
    %27 = tpu.matmul %26, %15, %cst_12 {dimension_numbers = #tpu.dot_dimension_numbers<[1], [0], [0], [1], [0, 0, 1, 1], [], []>} : vector<128x128xbf16>, vector<128x32xbf16>, vector<128x32xf32> -> vector<128x32xf32>
    %28 = tpu.reciprocal %25 {approx = true} : vector<128x1xf32> -> vector<128x1xf32>
    %29 = vector.broadcast %28 : vector<128x1xf32> to vector<128x32xf32>
    %30 = arith.mulf %27, %29 : vector<128x32xf32>
    %31 = arith.truncf %30 : vector<128x32xf32> to vector<128x32xbf16>
    %32 = vector.extract_strided_slice %5 {offsets = [0, 32], sizes = [128, 32], strides = [1, 1]} : vector<128x384xbf16> to vector<128x32xbf16>
    %33 = vector.extract_strided_slice %5 {offsets = [0, 160], sizes = [128, 32], strides = [1, 1]} : vector<128x384xbf16> to vector<128x32xbf16>
    %34 = vector.extract_strided_slice %5 {offsets = [0, 288], sizes = [128, 32], strides = [1, 1]} : vector<128x384xbf16> to vector<128x32xbf16>
    "tpu.trace_start"() <{level = 10 : i32, message = "td,sd->ts"}> : () -> ()
    %cst_13 = arith.constant dense<0.000000e+00> : vector<128x128xf32>
    %35 = tpu.matmul %32, %33, %cst_13 {dimension_numbers = #tpu.dot_dimension_numbers<[1], [1], [0], [0], [0, 0, 1, 0], [], []>} : vector<128x32xbf16>, vector<128x32xbf16>, vector<128x128xf32> -> vector<128x128xf32>
    "tpu.trace_stop"() : () -> ()
    %36 = vector.broadcast %12 : vector<1x128xf32> to vector<128x128xf32>
    %37 = arith.addf %35, %36 : vector<128x128xf32>
    %cst_14 = arith.constant dense<0xFF800000> : vector<128xf32>
    %38 = vector.multi_reduction <maximumf>, %37, %cst_14 [1] : vector<128x128xf32> to vector<128xf32>
    %39 = vector.shape_cast %38 : vector<128xf32> to vector<128x1xf32>
    %40 = vector.broadcast %39 : vector<128x1xf32> to vector<128x128xf32>
    %41 = arith.subf %37, %40 : vector<128x128xf32>
    %42 = math.exp %41 : vector<128x128xf32>
    %cst_15 = arith.constant dense<0.000000e+00> : vector<128xf32>
    %43 = vector.multi_reduction <add>, %42, %cst_15 [1] : vector<128x128xf32> to vector<128xf32>
    %44 = vector.shape_cast %43 : vector<128xf32> to vector<128x1xf32>
    %45 = arith.truncf %42 : vector<128x128xf32> to vector<128x128xbf16>
    %cst_16 = arith.constant dense<0.000000e+00> : vector<128x32xf32>
    %46 = tpu.matmul %45, %34, %cst_16 {dimension_numbers = #tpu.dot_dimension_numbers<[1], [0], [0], [1], [0, 0, 1, 1], [], []>} : vector<128x128xbf16>, vector<128x32xbf16>, vector<128x32xf32> -> vector<128x32xf32>
    %47 = tpu.reciprocal %44 {approx = true} : vector<128x1xf32> -> vector<128x1xf32>
    %48 = vector.broadcast %47 : vector<128x1xf32> to vector<128x32xf32>
    %49 = arith.mulf %46, %48 : vector<128x32xf32>
    %50 = arith.truncf %49 : vector<128x32xf32> to vector<128x32xbf16>
    %51 = vector.extract_strided_slice %5 {offsets = [0, 64], sizes = [128, 32], strides = [1, 1]} : vector<128x384xbf16> to vector<128x32xbf16>
    %52 = vector.extract_strided_slice %5 {offsets = [0, 192], sizes = [128, 32], strides = [1, 1]} : vector<128x384xbf16> to vector<128x32xbf16>
    %53 = vector.extract_strided_slice %5 {offsets = [0, 320], sizes = [128, 32], strides = [1, 1]} : vector<128x384xbf16> to vector<128x32xbf16>
    "tpu.trace_start"() <{level = 10 : i32, message = "td,sd->ts"}> : () -> ()
    %cst_17 = arith.constant dense<0.000000e+00> : vector<128x128xf32>
    %54 = tpu.matmul %51, %52, %cst_17 {dimension_numbers = #tpu.dot_dimension_numbers<[1], [1], [0], [0], [0, 0, 1, 0], [], []>} : vector<128x32xbf16>, vector<128x32xbf16>, vector<128x128xf32> -> vector<128x128xf32>
    "tpu.trace_stop"() : () -> ()
    %55 = vector.broadcast %12 : vector<1x128xf32> to vector<128x128xf32>
    %56 = arith.addf %54, %55 : vector<128x128xf32>
    %cst_18 = arith.constant dense<0xFF800000> : vector<128xf32>
    %57 = vector.multi_reduction <maximumf>, %56, %cst_18 [1] : vector<128x128xf32> to vector<128xf32>
    %58 = vector.shape_cast %57 : vector<128xf32> to vector<128x1xf32>
    %59 = vector.broadcast %58 : vector<128x1xf32> to vector<128x128xf32>
    %60 = arith.subf %56, %59 : vector<128x128xf32>
    %61 = math.exp %60 : vector<128x128xf32>
    %cst_19 = arith.constant dense<0.000000e+00> : vector<128xf32>
    %62 = vector.multi_reduction <add>, %61, %cst_19 [1] : vector<128x128xf32> to vector<128xf32>
    %63 = vector.shape_cast %62 : vector<128xf32> to vector<128x1xf32>
    %64 = arith.truncf %61 : vector<128x128xf32> to vector<128x128xbf16>
    %cst_20 = arith.constant dense<0.000000e+00> : vector<128x32xf32>
    %65 = tpu.matmul %64, %53, %cst_20 {dimension_numbers = #tpu.dot_dimension_numbers<[1], [0], [0], [1], [0, 0, 1, 1], [], []>} : vector<128x128xbf16>, vector<128x32xbf16>, vector<128x32xf32> -> vector<128x32xf32>
    %66 = tpu.reciprocal %63 {approx = true} : vector<128x1xf32> -> vector<128x1xf32>
    %67 = vector.broadcast %66 : vector<128x1xf32> to vector<128x32xf32>
    %68 = arith.mulf %65, %67 : vector<128x32xf32>
    %69 = arith.truncf %68 : vector<128x32xf32> to vector<128x32xbf16>
    %70 = vector.extract_strided_slice %5 {offsets = [0, 96], sizes = [128, 32], strides = [1, 1]} : vector<128x384xbf16> to vector<128x32xbf16>
    %71 = vector.extract_strided_slice %5 {offsets = [0, 224], sizes = [128, 32], strides = [1, 1]} : vector<128x384xbf16> to vector<128x32xbf16>
    %72 = vector.extract_strided_slice %5 {offsets = [0, 352], sizes = [128, 32], strides = [1, 1]} : vector<128x384xbf16> to vector<128x32xbf16>
    "tpu.trace_start"() <{level = 10 : i32, message = "td,sd->ts"}> : () -> ()
    %cst_21 = arith.constant dense<0.000000e+00> : vector<128x128xf32>
    %73 = tpu.matmul %70, %71, %cst_21 {dimension_numbers = #tpu.dot_dimension_numbers<[1], [1], [0], [0], [0, 0, 1, 0], [], []>} : vector<128x32xbf16>, vector<128x32xbf16>, vector<128x128xf32> -> vector<128x128xf32>
    "tpu.trace_stop"() : () -> ()
    %74 = vector.broadcast %12 : vector<1x128xf32> to vector<128x128xf32>
    %75 = arith.addf %73, %74 : vector<128x128xf32>
    %cst_22 = arith.constant dense<0xFF800000> : vector<128xf32>
    %76 = vector.multi_reduction <maximumf>, %75, %cst_22 [1] : vector<128x128xf32> to vector<128xf32>
    %77 = vector.shape_cast %76 : vector<128xf32> to vector<128x1xf32>
    %78 = vector.broadcast %77 : vector<128x1xf32> to vector<128x128xf32>
    %79 = arith.subf %75, %78 : vector<128x128xf32>
    %80 = math.exp %79 : vector<128x128xf32>
    %cst_23 = arith.constant dense<0.000000e+00> : vector<128xf32>
    %81 = vector.multi_reduction <add>, %80, %cst_23 [1] : vector<128x128xf32> to vector<128xf32>
    %82 = vector.shape_cast %81 : vector<128xf32> to vector<128x1xf32>
    %83 = arith.truncf %80 : vector<128x128xf32> to vector<128x128xbf16>
    %cst_24 = arith.constant dense<0.000000e+00> : vector<128x32xf32>
    %84 = tpu.matmul %83, %72, %cst_24 {dimension_numbers = #tpu.dot_dimension_numbers<[1], [0], [0], [1], [0, 0, 1, 1], [], []>} : vector<128x128xbf16>, vector<128x32xbf16>, vector<128x32xf32> -> vector<128x32xf32>
    %85 = tpu.reciprocal %82 {approx = true} : vector<128x1xf32> -> vector<128x1xf32>
    %86 = vector.broadcast %85 : vector<128x1xf32> to vector<128x32xf32>
    %87 = arith.mulf %84, %86 : vector<128x32xf32>
    %88 = arith.truncf %87 : vector<128x32xf32> to vector<128x32xbf16>
    %89 = tpu.concatenate %31, %50, %69, %88 in 1 : vector<128x32xbf16>, vector<128x32xbf16>, vector<128x32xbf16>, vector<128x32xbf16> -> vector<128x128xbf16>
    %c0_25 = arith.constant 0 : index
    %c0_26 = arith.constant 0 : index
    %90 = vector.load %arg3[%c0_25, %c0_26] : memref<128x128xbf16, #tpu.memory_space<vmem>>, vector<128x128xbf16>
    %cst_27 = arith.constant dense<0.000000e+00> : vector<128x128xf32>
    %91 = tpu.matmul %89, %90, %cst_27 {dimension_numbers = #tpu.dot_dimension_numbers<[1], [0], [0], [1], [0, 0, 1, 1], [], []>} : vector<128x128xbf16>, vector<128x128xbf16>, vector<128x128xf32> -> vector<128x128xf32>
    %c0_28 = arith.constant 0 : index
    %c0_29 = arith.constant 0 : index
    %c0_30 = arith.constant 0 : index
    %92 = vector.load %arg5[%c0_28, %c0_29, %c0_30] : memref<1x128x128xf32, #tpu.memory_space<vmem>>, vector<1x128x128xf32>
    %93 = vector.shape_cast %92 : vector<1x128x128xf32> to vector<128x128xf32>
    %94 = vector.shape_cast %91 : vector<128x128xf32> to vector<1x128x128xf32>
    tpu.vector_store %arg5[%c0_28, %c0_29, %c0_30], %94 {strides = array<i32>} : memref<1x128x128xf32, #tpu.memory_space<vmem>>, vector<1x128x128xf32>,
    return
  }
  func.func @transform_0(%arg0: i32) -> (i32, i32, i32) {
    %c0_i32 = arith.constant 0 : i32
    %c0_i32_0 = arith.constant 0 : i32
    %c0_i32_1 = arith.constant 0 : i32
    return %arg0, %c0_i32, %c0_i32_0 : i32, i32, i32
  }
  func.func @transform_1(%arg0: i32) -> (i32, i32) {
    %c0_i32 = arith.constant 0 : i32
    %c0_i32_0 = arith.constant 0 : i32
    %c0_i32_1 = arith.constant 0 : i32
    return %c0_i32, %c0_i32_0 : i32, i32
  }
  func.func @transform_2(%arg0: i32) -> (i32, i32) {
    %c0_i32 = arith.constant 0 : i32
    %c0_i32_0 = arith.constant 0 : i32
    %c0_i32_1 = arith.constant 0 : i32
    return %c0_i32, %c0_i32_0 : i32, i32
  }
  func.func @transform_3(%arg0: i32) -> (i32, i32, i32) {
    %c0_i32 = arith.constant 0 : i32
    %c0_i32_0 = arith.constant 0 : i32
    %c0_i32_1 = arith.constant 0 : i32
    return %arg0, %c0_i32, %c0_i32_0 : i32, i32, i32
  }
  func.func @transform_4(%arg0: i32) -> (i32, i32, i32) {
    %c0_i32 = arith.constant 0 : i32
    %c0_i32_0 = arith.constant 0 : i32
    %c0_i32_1 = arith.constant 0 : i32
    return %arg0, %c0_i32, %c0_i32_0 : i32, i32, i32
  }
}

</mosaic_0001>

<bundles_post_ra>
// kernel: tpu_custom_call.1
= control target key start
LH: loop header
LB: loop body
LE: loop exit
PB: predicated region body
PF: predicated region fallthrough
CT: control target
= control target key end

     0   :  { %9 = vsyncpa [#allocation3], 0  ;;  %s4799_s0 = inlined_call_operand.hbm [shape: f32[2,128,128], index: 0, kind: input, shape index: {}]   ;;  %s4800_s1 = inlined_call_operand.hbm [shape: bf16[128,384], index: 1, kind: input, shape index: {}]   ;;  %s4801_s2 = inlined_call_operand.hbm [shape: bf16[128,128], index: 2, kind: input, shape index: {}]   ;;  %s4802_s3 = inlined_call_operand.vmem [shape: s32[2,1,128], index: 3, kind: input, shape index: {}]   ;;  %s4803_s4 = inlined_call_operand.hbm [shape: f32[2,128,128], index: 4, kind: output, shape index: {}]  }
   0x1   :  { %11 = vsyncpa [#allocation3 + $0x1], 0 }
   0x2   :  { %12 = vsyncpa [#allocation6], 0 }
   0x3   :  { %13 = vsyncpa [#allocation4], 0 }
   0x4   :  { %15 = vsyncpa [#allocation4 + $0x1], 0  ;;  %s3447_s15 = smov 0   ;;  %s3449_s16 = smov 0  }
   0x5   :  { %s3451_s17 = smov 0   ;;  %s3453_s18 = smov 0  }
   0x6 LB: > { %s3468_s19 = sadd.s32 4294967295, %s3406_s18   ;;  %s2691_s20 = sadd.s32 4294967294, %s3406_s18   ;;  %s3406_s18 = sphi %s3453_s18, %s4845_s18   ;;  %s3402_s17 = sphi %s3451_s17, %s4844_s17   ;;  %s3398_s16 = sphi %s3449_s16, %s4843_s16   ;;  %s3394_s15 = sphi %s3447_s15, %s4842_s15  }
   0x7   : > { %p41_p0 = scmp.ne.s32.totalorder %s3398_s16, %s3394_s15  ;;  %p42_p1 = scmp.eq.s32.totalorder %s3468_s19, 0 }
   0x8   : > { %p133_p2 = scmp.eq.s32.totalorder %s3468_s19, 1  ;;  %p139_p3 = scmp.eq.s32.totalorder %s2691_s20, 1 }
   0x9   : > { %p3477_p4 = por %p42_p1, %p41_p0  ;;  %p2692_p5 = scmp.ge.s32.totalorder %s3406_s18, 1 }
   0xa   : > { %p3482_p6 = por %p139_p3, %p41_p0  ;;  %p146_p7 = scmp.lt.s32.totalorder %s3406_s18, 3 }
   0xb   : > { %s157_s25 = sshll.u32 %s4800_s1, 4  ;;  %s3408_s27 = smov [#allocation5]   ;;  %s158_s25 = int_to_ptr.hbm [resolvable:$true] %s157_s25 }
   0xc   : > { %p3490_p8 = pnand %p2692_p5, %p146_p7  ;;  %s159_s28 = sshll.u32 %s3408_s27, 4  ;;  %s160_s28 = int_to_ptr.vmem [resolvable:$true] %s159_s28 }
   0xd   : > { %s171_s5 = sshll.u32 %s4801_s2, 4  ;;  %s3409_s6 = smov 192   ;;  %s172_s5 = int_to_ptr.hbm [resolvable:$true] %s171_s5 }
   0xe   : > { %p2923_p9 = pneg %p3490_p8  ;;  %s3410_s7 = smov 12  }
   0xf   : > { %s3411_s8 = smov [#allocation7]   ;;  %s3412_s10 = smov 64  }
  0x10   : > { %p2924_p10 = pnand %p2923_p9, %p42_p1  ;;  %s173_s9 = sshll.u32 %s3411_s8, 4  ;;  %s174_s9 = int_to_ptr.vmem [resolvable:$true] %s173_s9 }
  0x11   : > { %s3413_s11 = smov 4   ;;  %s3503_s12 = sadd.s32 1, %s3406_s18  }
  0x12   : > { %2926 = dma.hbm_to_vmem [thread:$0]  (!%p2924_p10), %s158_s25, 3072, %s160_s28, [#allocation6], %s3409_s6, %s3409_s6, %s3410_s7  }
  0x13   : > { %2929 = dma.hbm_to_vmem [thread:$0]  (!%p2924_p10), %s172_s5, 1024, %s174_s9, [#allocation6], %s3412_s10, %s3412_s10, %s3413_s11  }
  0x14   : > { %s25_s13 = ssub.s32 %s3406_s18, %s3503_s12  ;;  %s28_s14 = sadd.s32 1, %s3402_s17 }
  0x15   : > { %p26_p12 = scmp.eq.s32.totalorder %s25_s13, 0  ;;  %p35_p13 = scmp.ne.s32.totalorder %s3402_s17, %s3398_s16 }
  0x16   : > { %p36_p0 = scmp.eq.s32.totalorder %s3406_s18, 0  ;;  %p2940_p7 = scmp.lt.s32.totalorder %s3406_s18, 2 }
  0x17   : > { %s3512_s20 = scalar_select %p26_p12, %s3402_s17, %s28_s14  }
  0x18   : > { %p37_p3 = por %p36_p0, %p35_p13  ;;  %p3516_p5 = por %p133_p2, %p35_p13 }
  0x19   : > { %s187_s24 = sand.u32 1, %s3402_s17   ;;  %s2869_s27 = sshll.u32 %s3406_s18, 7 }
  0x1a   : > { %s2696_s25 = sshll.u32 %s187_s24, 7  ;;  %s196_s30 = scalar_lea.hbm %s4799_s0, %s2869_s27 }
  0x1b   : > { %s191_s5 = scalar_lea.vmem [#allocation2], %s2696_s25  ;;  %s197_s7 = sshll.u32 %s196_s30, 4  ;;  %s198_s7 = int_to_ptr.hbm [resolvable:$true] %s197_s7 }
  0x1c   : > { %s199_s6 = sshll.u32 %s191_s5, 4  ;;  %p3526_p9 = pnand %p2940_p7, %p37_p3  ;;  %s200_s6 = int_to_ptr.vmem [resolvable:$true] %s199_s6 }
  0x1d   : > { %s188_s9 = scalar_lea.sflag [#allocation3], %s187_s24  ;;  %s3306_s10 = sshra.s32 %s198_s7, 4  ;;  %s3307_s10 = int_to_ptr.hbm [resolvable:$true] %s3306_s10 }
  0x1e   : > { %s3308_s11 = scalar_lea.hbm %s3307_s10, 128  ;;  %p3310_p10 = pneg %p3526_p9 }
  0x1f   : > { %p3309_p2 = scmp.ne.s32.totalorder %s3307_s10, %s3308_s11  ;;  %s3313_s25 = scalar_lea.hbm %s4799_s0, 256 }
  0x20   : > { %p3314_p0 = scmp.lt.s32.totalorder %s3307_s10, %s4799_s0  ;;  %p3315_p3 = scmp.lt.s32.totalorder %s3313_s25, %s3308_s11 }
  0x21   : > { %p3311_p12 = pnand %p3310_p10, %p3309_p2 }
  0x22   : > { %p3316_p7 = por %p3315_p3, %p3314_p0 }
  0x23   : > { %p3312_p13 = pneg %p3311_p12 }
  0x25   : > { %p3317_p11 = pnand %p3316_p7, %p3312_p13 }
  0x27   : > { %3320 = shalt.err (!%p3317_p11)
}
  0x28   : > { %s3414_s24 = smov 128   ;;  %s3415_s29 = smov 8  }
  0x29   : > { %2933 = dma.hbm_to_vmem [thread:$0]  (!%p3526_p9), %s198_s7, 2048, %s200_s6, %s188_s9, %s3414_s24, %s3414_s24, %s3415_s29  }
  0x2a   : > { %217 = sbr.rel (%p3490_p8) target bundleno = 1593 (0x639), region = 36 }
  0x2f   : > { %s3543_s30 = sand.u32 1, %s3398_s16  }
  0x30   : > { %s2700_s5 = sshll.u32 %s3543_s30, 7  ;;  %s220_s10 = scalar_lea.sflag [#allocation3], %s3543_s30 }
  0x31   : > { %s3549_s11 = scalar_lea.vmem [#allocation2], %s2700_s5 }
  0x32   : > { %3381 = dma.done.wait (%p3477_p4), %s220_s10, 2048  }
  0x33   : > { %3383 = vsyncadd (%p3477_p4), %s220_s10, 4294965248 }
  0x34   : > { %3385 = dma.done.wait (%p42_p1), [#allocation6], 4096  }
  0x35   : > { %3387 = vsyncadd (%p42_p1), [#allocation6], 4294963200  ;;  %v2790_v0 = vld [vmem:[#allocation5 + $0xa8] sm:$0xf]  ;;  %v2892_v1 = vld [vmem:[#allocation5 + $0xb0] sm:$0xf0] }
  0x36   : > { %v2891_v2 = vld [vmem:[#allocation5 + $0xac] sm:$0xf]  ;;  %v2791_v3 = vor.u32 %v2892_v1, %v2790_v0  ;;  %v2792_v4 = vld [vmem:[#allocation5 + $0xb4] sm:$0xf0]  ;;  %v2798_v5 = vld [vmem:[#allocation5 + $0xb0] sm:$0xf] }
  0x37   : > { %v2893_v6 = vld [vmem:[#allocation5 + $0xb8] sm:$0xf0]  ;;  %v2795_v7 = vor.u32 %v2891_v2, %v2792_v4  ;;  %v2778_v9 = vld [vmem:[#allocation5 + $0x90] sm:$0xf]  ;;  %v2888_v11 = vld [vmem:[#allocation5 + $0x94] sm:$0xf] }
  0x38   : > { %v2799_v8 = vor.u32 %v2893_v6, %v2798_v5  ;;  %v2889_v10 = vld [vmem:[#allocation5 + $0x98] sm:$0xf0]  ;;  %449 = vmatpush.bf16.msra.mxu0 %v2791_v3  ;;  %v2780_v13 = vld [vmem:[#allocation5 + $0x9c] sm:$0xf0]  ;;  %v2786_v14 = vld [vmem:[#allocation5 + $0x98] sm:$0xf] }
  0x39   : > { %v2779_v12 = vor.u32 %v2889_v10, %v2778_v9  ;;  %v2890_v15 = vld [vmem:[#allocation5 + $0xa0] sm:$0xf0]  ;;  %498 = vmatpush.bf16.msra.mxu1 %v2795_v7  ;;  %v2783_v16 = vor.u32 %v2888_v11, %v2780_v13  ;;  %v2766_v18 = vld [vmem:[#allocation5 + $0x78] sm:$0xf]  ;;  %v2885_v20 = vld [vmem:[#allocation5 + $0x7c] sm:$0xf] }
  0x3a   : > { %547 = vmatpush.bf16.msra.mxu2 %v2799_v8  ;;  %v2787_v17 = vor.u32 %v2890_v15, %v2786_v14  ;;  %v2886_v19 = vld [vmem:[#allocation5 + $0x80] sm:$0xf0]  ;;  %v2768_v21 = vld [vmem:[#allocation5 + $0x84] sm:$0xf0]  ;;  %v2774_v22 = vld [vmem:[#allocation5 + $0x80] sm:$0xf] }
  0x3b   : > { %v2887_v23 = vld [vmem:[#allocation5 + $0x88] sm:$0xf0]  ;;  %v2767_v24 = vor.u32 %v2886_v19, %v2766_v18  ;;  %v2771_v25 = vor.u32 %v2885_v20, %v2768_v21  ;;  %v2754_v27 = vld [vmem:[#allocation5 + $0x60] sm:$0xf]  ;;  %v2882_v29 = vld [vmem:[#allocation5 + $0x64] sm:$0xf] }
  0x3c   : > { %450 = vmatpush.bf16.msra.mxu0 %v2779_v12  ;;  %v2775_v26 = vor.u32 %v2887_v23, %v2774_v22  ;;  %v2883_v28 = vld [vmem:[#allocation5 + $0x68] sm:$0xf0]  ;;  %v2756_v30 = vld [vmem:[#allocation5 + $0x6c] sm:$0xf0]  ;;  %v2762_v31 = vld [vmem:[#allocation5 + $0x68] sm:$0xf] }
  0x3d   : > { %499 = vmatpush.bf16.msra.mxu1 %v2783_v16  ;;  %v2884_v32 = vld [vmem:[#allocation5 + $0x70] sm:$0xf0]  ;;  %v2755_v33 = vor.u32 %v2883_v28, %v2754_v27  ;;  %v2759_v34 = vor.u32 %v2882_v29, %v2756_v30  ;;  %v2742_v36 = vld [vmem:[#allocation5 + $0x48] sm:$0xf]  ;;  %v2879_v38 = vld [vmem:[#allocation5 + $0x4c] sm:$0xf] }
  0x3e   : > { %548 = vmatpush.bf16.msra.mxu2 %v2787_v17  ;;  %v2763_v35 = vor.u32 %v2884_v32, %v2762_v31  ;;  %v2880_v37 = vld [vmem:[#allocation5 + $0x50] sm:$0xf0]  ;;  %v2744_v39 = vld [vmem:[#allocation5 + $0x54] sm:$0xf0]  ;;  %v2750_v40 = vld [vmem:[#allocation5 + $0x50] sm:$0xf] }
  0x3f   : > { %v2881_v41 = vld [vmem:[#allocation5 + $0x58] sm:$0xf0]  ;;  %v2743_v42 = vor.u32 %v2880_v37, %v2742_v36  ;;  %v2747_v43 = vor.u32 %v2879_v38, %v2744_v39  ;;  %v2730_v45 = vld [vmem:[#allocation5 + $0x30] sm:$0xf]  ;;  %v2876_v47 = vld [vmem:[#allocation5 + $0x34] sm:$0xf] }
  0x40   : > { %451 = vmatpush.bf16.msra.mxu0 %v2767_v24  ;;  %v2751_v44 = vor.u32 %v2881_v41, %v2750_v40  ;;  %v2877_v46 = vld [vmem:[#allocation5 + $0x38] sm:$0xf0]  ;;  %v2732_v48 = vld [vmem:[#allocation5 + $0x3c] sm:$0xf0]  ;;  %v2738_v49 = vld [vmem:[#allocation5 + $0x38] sm:$0xf] }
  0x41   : > { %500 = vmatpush.bf16.msra.mxu1 %v2771_v25  ;;  %v2878_v50 = vld [vmem:[#allocation5 + $0x40] sm:$0xf0]  ;;  %v2731_v51 = vor.u32 %v2877_v46, %v2730_v45  ;;  %v2735_v52 = vor.u32 %v2876_v47, %v2732_v48  ;;  %v2718_v54 = vld [vmem:[#allocation5 + $0x18] sm:$0xf]  ;;  %v2873_v56 = vld [vmem:[#allocation5 + $0x1c] sm:$0xf] }
  0x42   : > { %549 = vmatpush.bf16.msra.mxu2 %v2775_v26  ;;  %v2739_v53 = vor.u32 %v2878_v50, %v2738_v49  ;;  %v2874_v55 = vld [vmem:[#allocation5 + $0x20] sm:$0xf0]  ;;  %v2720_v57 = vld [vmem:[#allocation5 + $0x24] sm:$0xf0]  ;;  %v2726_v58 = vld [vmem:[#allocation5 + $0x20] sm:$0xf] }
  0x43   : > { %v2875_v59 = vld [vmem:[#allocation5 + $0x28] sm:$0xf0]  ;;  %v2719_v60 = vor.u32 %v2874_v55, %v2718_v54  ;;  %v2723_v61 = vor.u32 %v2873_v56, %v2720_v57  ;;  %v2706_v63 = vld [vmem:[#allocation5] sm:$0xf]  ;;  %v2870_v1 = vld [vmem:[#allocation5 + $0x4] sm:$0xf] }
  0x44   : > { %452 = vmatpush.bf16.msra.mxu0 %v2755_v33  ;;  %v2727_v62 = vor.u32 %v2875_v59, %v2726_v58  ;;  %v2871_v0 = vld [vmem:[#allocation5 + $0x8] sm:$0xf0]  ;;  %v2708_v2 = vld [vmem:[#allocation5 + $0xc] sm:$0xf0]  ;;  %v2714_v3 = vld [vmem:[#allocation5 + $0x8] sm:$0xf] }
  0x45   : > { %501 = vmatpush.bf16.msra.mxu1 %v2759_v34  ;;  %v2872_v4 = vld [vmem:[#allocation5 + $0x10] sm:$0xf0]  ;;  %v2707_v5 = vor.u32 %v2871_v0, %v2706_v63  ;;  %v265_v6 = vld [vmem:[%s3549_s11] sm:$0xff]  ;;  %v266_v7 = vld [vmem:[%s3549_s11 + $0x8] sm:$0xff]  ;;  %v2711_v8 = vor.u32 %v2870_v1, %v2708_v2  ;;  %s3416_s21 = smov 64   ;;  %s3417_s26 = smov 96  }
  0x46   : > { %550 = vmatpush.bf16.msra.mxu2 %v2763_v35  ;;  %v2715_v9 = vor.u32 %v2872_v4, %v2714_v3  ;;  %v281_v10 = vpack.c.bf16 %v266_v7, %v265_v6  ;;  %v267_v11 = vld [vmem:[%s3549_s11 + $0x10] sm:$0xff]  ;;  %v268_v12 = vld [vmem:[%s3549_s11 + $0x18] sm:$0xff]  ;;  %v269_v14 = vld [vmem:[%s3549_s11 + $0x20] sm:$0xff]  ;;  %s3418_s6 = smov 32   ;;  %vm698_vm0 = vcmask 261120   ;;  %p262_p1 = scmp.lt.s32.totalorder %s3468_s19, 1 }
  0x47   : > { %v282_v13 = vpack.c.bf16 %v268_v12, %v267_v11  ;;  %v270_v15 = vld [vmem:[%s3549_s11 + $0x28] sm:$0xff]  ;;  %v271_v17 = vld [vmem:[%s3549_s11 + $0x30] sm:$0xff]  ;;  %v272_v18 = vld [vmem:[%s3549_s11 + $0x38] sm:$0xff]  ;;  %vm2403_vm2 = vcmask 523264   ;;  %vm2420_vm3 = vcmask 785408   ;;  %s4734_s14 = scalar_lea.vmem [#allocation8], %s2700_s5 }
  0x48   : > { %453 = vmatpush.bf16.msra.mxu0 %v2743_v42  ;;  %v283_v16 = vpack.c.bf16 %v270_v15, %v269_v14  ;;  %v284_v19 = vpack.c.bf16 %v272_v18, %v271_v17  ;;  %v273_v20 = vld [vmem:[%s3549_s11 + $0x40] sm:$0xff]  ;;  %v274_v21 = vld [vmem:[%s3549_s11 + $0x48] sm:$0xff]  ;;  %v275_v23 = vld [vmem:[%s3549_s11 + $0x50] sm:$0xff]  ;;  %s263_s7 = scalar_select %p262_p1, %s3468_s19, 1 }
  0x49   : > { %502 = vmatpush.bf16.msra.mxu1 %v2747_v43  ;;  %v285_v22 = vpack.c.bf16 %v274_v21, %v273_v20  ;;  %v276_v24 = vld [vmem:[%s3549_s11 + $0x58] sm:$0xff]  ;;  %v277_v26 = vld [vmem:[%s3549_s11 + $0x60] sm:$0xff]  ;;  %v278_v27 = vld [vmem:[%s3549_s11 + $0x68] sm:$0xff]  ;;  %s2902_s25 = sshll.u32 %s3468_s19, 7  ;;  %s2587_s29 = sshll.u32 %s4734_s14, 4  ;;  %s2588_s29 = int_to_ptr.vmem [resolvable:$true] %s2587_s29 }
  0x4a   : > { %551 = vmatpush.bf16.msra.mxu2 %v2751_v44  ;;  %v286_v25 = vpack.c.bf16 %v276_v24, %v275_v23  ;;  %v287_v28 = vpack.c.bf16 %v278_v27, %v277_v26  ;;  %v279_v29 = vld [vmem:[%s3549_s11 + $0x70] sm:$0xff]  ;;  %v280_v30 = vld [vmem:[%s3549_s11 + $0x78] sm:$0xff]  ;;  %s264_s13 = scalar_lea.vmem %s4802_s3, %s263_s7  ;;  %s2586_s24 = scalar_lea.hbm %s4803_s4, %s2902_s25 }
  0x4b   : > { %v288_v31 = vpack.c.bf16 %v280_v30, %v279_v29  ;;  %s2589_s5 = sshll.u32 %s2586_s24, 4  ;;  %s2575_s10 = scalar_lea.sflag [#allocation4], %s3543_s30  ;;  %s2590_s5 = int_to_ptr.hbm [resolvable:$true] %s2589_s5 }
  0x4c   : > { %454 = vmatpush.bf16.msra.mxu0 %v2731_v51  ;;  %s3350_s11 = sshra.s32 %s2590_s5, 4  ;;  %s3351_s11 = int_to_ptr.hbm [resolvable:$true] %s3350_s11 }
  0x4d   : > { %503 = vmatpush.bf16.msra.mxu1 %v2735_v52  ;;  %p3357_p9 = scmp.lt.s32.totalorder %s3351_s11, %s4803_s4 }
  0x4e   : > { %552 = vmatpush.bf16.msra.mxu2 %v2739_v53 }
  0x50   : > { %455 = vmatpush.bf16.msra.mxu0 %v2719_v60 }
  0x51   : > { %504 = vmatpush.bf16.msra.mxu1 %v2723_v61 }
  0x52   : > { %553 = vmatpush.bf16.msra.mxu2 %v2727_v62 }
  0x54   : > { %456 = vmatpush.bf16.msra.mxu0 %v2707_v5 }
  0x55   : > { %505 = vmatpush.bf16.msra.mxu1 %v2711_v8 }
  0x56   : > { %554 = vmatpush.bf16.msra.mxu2 %v2715_v9 }
  0x57   : > { %457 = vmatmul.bf16.vlgmr.msra.gmra.mxu0 %v281_v10 }
  0x58   : > { %506 = vmatmul.bf16.vlgmr.msra.gmra.mxu1 %v281_v10 }
  0x59   : > { %555 = vmatmul.bf16.vlgmr.msra.gmra.mxu2 %v281_v10 }
  0x67   : > { %462 = vmatmul.bf16.gmra.mxu0 %v282_v13 }
  0x68   : > { %511 = vmatmul.bf16.gmra.mxu1 %v282_v13 }
  0x69   : > { %560 = vmatmul.bf16.gmra.mxu2 %v282_v13 }
  0x77   : > { %467 = vmatmul.bf16.gmra.mxu0 %v283_v16 }
  0x78   : > { %516 = vmatmul.bf16.gmra.mxu1 %v283_v16 }
  0x79   : > { %565 = vmatmul.bf16.gmra.mxu2 %v283_v16 }
  0x87   : > { %472 = vmatmul.bf16.gmra.mxu0 %v284_v19 }
  0x88   : > { %521 = vmatmul.bf16.gmra.mxu1 %v284_v19 }
  0x89   : > { %570 = vmatmul.bf16.gmra.mxu2 %v284_v19 }
  0x97   : > { %477 = vmatmul.bf16.gmra.mxu0 %v285_v22 }
  0x98   : > { %526 = vmatmul.bf16.gmra.mxu1 %v285_v22 }
  0x99   : > { %575 = vmatmul.bf16.gmra.mxu2 %v285_v22 }
  0xa7   : > { %482 = vmatmul.bf16.gmra.mxu0 %v286_v25 }
  0xa8   : > { %531 = vmatmul.bf16.gmra.mxu1 %v286_v25 }
  0xa9   : > { %580 = vmatmul.bf16.gmra.mxu2 %v286_v25 }
  0xb7   : > { %487 = vmatmul.bf16.gmra.mxu0 %v287_v28 }
  0xb8   : > { %536 = vmatmul.bf16.gmra.mxu1 %v287_v28 }
  0xb9   : > { %585 = vmatmul.bf16.gmra.mxu2 %v287_v28 }
  0xc7   : > { %492 = vmatmul.bf16.gmra.mxu0 %v288_v31 }
  0xc8   : > { %541 = vmatmul.bf16.gmra.mxu1 %v288_v31 }
  0xc9   : > { %590 = vmatmul.bf16.gmra.mxu2 %v288_v31 }
  0xd4   : > { %v458_v32 = vpop.f32.mrf.mxu0 }
  0xd5   : > { %v507_v33 = vpop.f32.mrf.mxu1 }
  0xd6   : > { %v596_v35 = vpack.c.bf16 %v507_v33, %v458_v32 }
  0xd8   : > { %v650_v39 = vunpack.c.l.b16 %v596_v35  ;;  %v674_v40 = vunpack.c.h.b16 %v596_v35 }
  0xdc   : > { %v556_v34 = vpop.f32.mrf.mxu2  ;;  %v460_v36 = vpop.f32.mrf.mxu0 }
  0xdd   : > { %v509_v37 = vpop.f32.mrf.mxu1  ;;  %v597_v52 = vpack.c.bf16 %v556_v34, %v556_v34 }
  0xde   : > { %v598_v38 = vpack.c.bf16 %v509_v37, %v460_v36 }
  0xdf   : > { %v932_v60 = vunpack.c.l.b16 %v597_v52 }
  0xe0   : > { %v651_v41 = vunpack.c.l.b16 %v598_v38  ;;  %v675_v42 = vunpack.c.h.b16 %v598_v38 }
  0xe2   : > { %v3575_v43 = vpack.c.b16 %v651_v41, %v650_v39  ;;  %v3577_v44 = vpack.c.b16 %v675_v42, %v674_v40 }
  0xe4   : > { %v558_v45 = vpop.f32.mrf.mxu2  ;;  %1447 = vrot.lane.b32.xlu0 %v3577_v44, %s3416_s21  ;;  %1077 = vrot.lane.b32.xlu1 %v3577_v44, %s3417_s26  ;;  %v463_v46 = vpop.f32.mrf.mxu0 }
  0xe5   : > { %1061 = vrot.lane.b32.xlu2 %v3575_v43, %s3417_s26  ;;  %v512_v47 = vpop.f32.mrf.mxu1  ;;  %v599_v48 = vpack.c.bf16 %v558_v45, %v558_v45 }
  0xe6   : > { %v600_v50 = vpack.c.bf16 %v512_v47, %v463_v46 }
  0xe7   : > { %v933_v55 = vunpack.c.l.b16 %v599_v48 }
  0xe8   : > { %v652_v56 = vunpack.c.l.b16 %v600_v50  ;;  %v676_v57 = vunpack.c.h.b16 %v600_v50 }
  0xe9   : > { %v3595_v63 = vpack.c.b16 %v933_v55, %v932_v60 }
  0xec   : > { %v561_v49 = vpop.f32.mrf.mxu2  ;;  %1817 = vrot.lane.b32.xlu1 %v3577_v44, %s3418_s6  ;;  %1801 = vrot.lane.b32.xlu0 %v3575_v43, %s3418_s6  ;;  %v465_v51 = vpop.f32.mrf.mxu0 }
  0xed   : > { %1431 = vrot.lane.b32.xlu2 %v3575_v43, %s3416_s21  ;;  %v514_v53 = vpop.f32.mrf.mxu1  ;;  %v601_v1 = vpack.c.bf16 %v561_v49, %v561_v49 }
  0xee   : > { %v602_v54 = vpack.c.bf16 %v514_v53, %v465_v51 }
  0xef   : > { %v934_v6 = vunpack.c.l.b16 %v601_v1 }
  0xf0   : > { %v653_v58 = vunpack.c.l.b16 %v602_v54  ;;  %v677_v59 = vunpack.c.h.b16 %v602_v54 }
  0xf2   : > { %v3591_v61 = vpack.c.b16 %v653_v58, %v652_v56  ;;  %v3593_v62 = vpack.c.b16 %v677_v59, %v676_v57 }
  0xf4   : > { %v563_v0 = vpop.f32.mrf.mxu2  ;;  %1079 = vrot.lane.b32.xlu0 %v3593_v62, %s3417_s26  ;;  %1433 = vrot.lane.b32.xlu1 %v3591_v61, %s3416_s21  ;;  %v468_v3 = vpop.f32.mrf.mxu0 }
  0xf5   : > { %v603_v2 = vpack.c.bf16 %v563_v0, %v563_v0  ;;  %1310 = vrot.lane.b32.xlu2 %v3595_v63, %s3417_s26  ;;  %v517_v4 = vpop.f32.mrf.mxu1 }
  0xf6   : > { %v604_v9 = vpack.c.bf16 %v517_v4, %v468_v3 }
  0xf7   : > { %v935_v5 = vunpack.c.l.b16 %v603_v2 }
  0xf8   : > { %v654_v13 = vunpack.c.l.b16 %v604_v9  ;;  %v678_v23 = vunpack.c.h.b16 %v604_v9 }
  0xf9   : > { %v3603_v7 = vpack.c.b16 %v935_v5, %v934_v6 }
  0xfc   : > { %v566_v8 = vpop.f32.mrf.mxu2  ;;  %1312 = vrot.lane.b32.xlu1 %v3603_v7, %s3417_s26  ;;  %1063 = vrot.lane.b32.xlu0 %v3591_v61, %s3417_s26  ;;  %v470_v10 = vpop.f32.mrf.mxu0 }
  0xfd   : > { %1819 = vrot.lane.b32.xlu2 %v3593_v62, %s3418_s6  ;;  %v519_v11 = vpop.f32.mrf.mxu1  ;;  %v605_v17 = vpack.c.bf16 %v566_v8, %v566_v8 }
  0xfe   : > { %v606_v12 = vpack.c.bf16 %v519_v11, %v470_v10 }
  0xff   : > { %v936_v24 = vunpack.c.l.b16 %v605_v17 }
 0x100   : > { %v655_v14 = vunpack.c.l.b16 %v606_v12  ;;  %v679_v21 = vunpack.c.h.b16 %v606_v12 }
 0x102   : > { %v3611_v15 = vpack.c.b16 %v655_v14, %v654_v13  ;;  %v3619_v25 = vpack.c.b16 %v679_v21, %v678_v23 }
 0x104   : > { %v568_v16 = vpop.f32.mrf.mxu2  ;;  %1449 = vrot.lane.b32.xlu0 %v3593_v62, %s3416_s21  ;;  %1065 = vrot.lane.b32.xlu1 %v3611_v15, %s3417_s26  ;;  %v473_v19 = vpop.f32.mrf.mxu0 }
 0x105   : > { %v607_v18 = vpack.c.bf16 %v568_v16, %v568_v16  ;;  %1803 = vrot.lane.b32.xlu2 %v3591_v61, %s3418_s6  ;;  %v522_v20 = vpop.f32.mrf.mxu1 }
 0x106   : > { %v608_v28 = vpack.c.bf16 %v522_v20, %v473_v19 }
 0x107   : > { %v937_v22 = vunpack.c.l.b16 %v607_v18 }
 0x108   : > { %v680_v32 = vunpack.c.h.b16 %v608_v28  ;;  %v656_v39 = vunpack.c.l.b16 %v608_v28 }
 0x109   : > { %v3621_v26 = vpack.c.b16 %v937_v22, %v936_v24 }
 0x10c   : > { %v571_v27 = vpop.f32.mrf.mxu2  ;;  %1314 = vrot.lane.b32.xlu0 %v3621_v26, %s3417_s26  ;;  %1451 = vrot.lane.b32.xlu1 %v3619_v25, %s3416_s21  ;;  %v475_v29 = vpop.f32.mrf.mxu0 }
 0x10d   : > { %1081 = vrot.lane.b32.xlu2 %v3619_v25, %s3417_s26  ;;  %v524_v30 = vpop.f32.mrf.mxu1  ;;  %v609_v50 = vpack.c.bf16 %v571_v27, %v571_v27 }
 0x10e   : > { %v610_v31 = vpack.c.bf16 %v524_v30, %v475_v29 }
 0x10f   : > { %v938_v58 = vunpack.c.l.b16 %v609_v50 }
 0x110   : > { %v681_v33 = vunpack.c.h.b16 %v610_v31  ;;  %v657_v38 = vunpack.c.l.b16 %v610_v31 }
 0x112   : > { %v3629_v34 = vpack.c.b16 %v681_v33, %v680_v32  ;;  %v3637_v40 = vpack.c.b16 %v657_v38, %v656_v39 }
 0x114   : > { %v573_v35 = vpop.f32.mrf.mxu2  ;;  %1435 = vrot.lane.b32.xlu1 %v3611_v15, %s3416_s21  ;;  %1823 = vrot.lane.b32.xlu0 %v3629_v34, %s3418_s6  ;;  %v478_v36 = vpop.f32.mrf.mxu0 }
 0x115   : > { %1821 = vrot.lane.b32.xlu2 %v3619_v25, %s3418_s6  ;;  %v527_v37 = vpop.f32.mrf.mxu1  ;;  %v611_v51 = vpack.c.bf16 %v573_v35, %v573_v35 }
 0x116   : > { %v612_v41 = vpack.c.bf16 %v527_v37, %v478_v36 }
 0x117   : > { %v939_v59 = vunpack.c.l.b16 %v611_v51 }
 0x118   : > { %v682_v47 = vunpack.c.h.b16 %v612_v41  ;;  %v658_v54 = vunpack.c.l.b16 %v612_v41 }
 0x119   : > { %v3655_v0 = vpack.c.b16 %v939_v59, %v938_v58 }
 0x11c   : > { %v576_v42 = vpop.f32.mrf.mxu2  ;;  %1453 = vrot.lane.b32.xlu1 %v3629_v34, %s3416_s21  ;;  %1437 = vrot.lane.b32.xlu0 %v3637_v40, %s3416_s21  ;;  %v480_v45 = vpop.f32.mrf.mxu0 }
 0x11d   : > { %1805 = vrot.lane.b32.xlu2 %v3611_v15, %s3418_s6  ;;  %v529_v46 = vpop.f32.mrf.mxu1  ;;  %v613_v9 = vpack.c.bf16 %v576_v42, %v576_v42 }
 0x11e   : > { %v614_v48 = vpack.c.bf16 %v529_v46, %v480_v45 }
 0x11f   : > { %v940_v14 = vunpack.c.l.b16 %v613_v9 }
 0x120   : > { %v683_v49 = vunpack.c.h.b16 %v614_v48  ;;  %v659_v55 = vunpack.c.l.b16 %v614_v48 }
 0x122   : > { %v3645_v52 = vpack.c.b16 %v683_v49, %v682_v47  ;;  %v3653_v60 = vpack.c.b16 %v659_v55, %v658_v54 }
 0x124   : > { %v578_v53 = vpop.f32.mrf.mxu2  ;;  %1807 = vrot.lane.b32.xlu0 %v3637_v40, %s3418_s6  ;;  %1085 = vrot.lane.b32.xlu1 %v3645_v52, %s3417_s26  ;;  %v483_v56 = vpop.f32.mrf.mxu0 }
 0x125   : > { %1083 = vrot.lane.b32.xlu2 %v3629_v34, %s3417_s26  ;;  %v532_v57 = vpop.f32.mrf.mxu1  ;;  %v615_v10 = vpack.c.bf16 %v578_v53, %v578_v53 }
 0x126   : > { %v616_v1 = vpack.c.bf16 %v532_v57, %v483_v56 }
 0x127   : > { %v941_v16 = vunpack.c.l.b16 %v615_v10 }
 0x128   : > { %v684_v5 = vunpack.c.h.b16 %v616_v1  ;;  %v660_v22 = vunpack.c.l.b16 %v616_v1 }
 0x129   : > { %v3671_v18 = vpack.c.b16 %v941_v16, %v940_v14 }
 0x12c   : > { %v581_v2 = vpop.f32.mrf.mxu2  ;;  %1316 = vrot.lane.b32.xlu0 %v3655_v0, %s3417_s26  ;;  %1069 = vrot.lane.b32.xlu1 %v3653_v60, %s3417_s26  ;;  %v485_v3 = vpop.f32.mrf.mxu0 }
 0x12d   : > { %1067 = vrot.lane.b32.xlu2 %v3637_v40, %s3417_s26  ;;  %v534_v4 = vpop.f32.mrf.mxu1  ;;  %v617_v27 = vpack.c.bf16 %v581_v2, %v581_v2 }
 0x12e   : > { %v618_v6 = vpack.c.bf16 %v534_v4, %v485_v3 }
 0x12f   : > { %v942_v31 = vunpack.c.l.b16 %v617_v27 }
 0x130   : > { %v685_v8 = vunpack.c.h.b16 %v618_v6  ;;  %v661_v23 = vunpack.c.l.b16 %v618_v6 }
 0x132   : > { %v3663_v11 = vpack.c.b16 %v685_v8, %v684_v5  ;;  %v3681_v29 = vpack.c.b16 %v661_v23, %v660_v22 }
 0x134   : > { %v583_v12 = vpop.f32.mrf.mxu2  ;;  %1825 = vrot.lane.b32.xlu0 %v3645_v52, %s3418_s6  ;;  %1087 = vrot.lane.b32.xlu1 %v3663_v11, %s3417_s26  ;;  %v488_v13 = vpop.f32.mrf.mxu0  ;;  %v739_v22 = vsel %vm698_vm0, %v3663_v11, 0 }
 0x135   : > { %1455 = vrot.lane.b32.xlu2 %v3645_v52, %s3416_s21  ;;  %v537_v17 = vpop.f32.mrf.mxu1  ;;  %v619_v28 = vpack.c.bf16 %v583_v12, %v583_v12 }
 0x136   : > { %v620_v38 = vpack.c.bf16 %v537_v17, %v488_v13 }
 0x137   : > { %v943_v32 = vunpack.c.l.b16 %v619_v28 }
 0x138   : > { %v686_v47 = vunpack.c.h.b16 %v620_v38  ;;  %v662_v51 = vunpack.c.l.b16 %v620_v38 }
 0x139   : > { %v3691_v37 = vpack.c.b16 %v943_v32, %v942_v31 }
 0x13c   : > { %v586_v19 = vpop.f32.mrf.mxu2  ;;  %1439 = vrot.lane.b32.xlu0 %v3653_v60, %s3416_s21  ;;  %1827 = vrot.lane.b32.xlu1 %v3663_v11, %s3418_s6  ;;  %v490_v20 = vpop.f32.mrf.mxu0 }
 0x13d   : > { %1318 = vrot.lane.b32.xlu2 %v3671_v18, %s3417_s26  ;;  %v539_v21 = vpop.f32.mrf.mxu1  ;;  %v621_v57 = vpack.c.bf16 %v586_v19, %v586_v19 }
 0x13e   : > { %v622_v39 = vpack.c.bf16 %v539_v21, %v490_v20 }
 0x13f   : > { %v3679_v24 = vpop.permute.xlu2 %1061  ;;  %v944_v8 = vunpack.c.l.b16 %v621_v57 }
 0x140   : > { %v687_v48 = vunpack.c.h.b16 %v622_v39  ;;  %v663_v53 = vunpack.c.l.b16 %v622_v39 }
 0x142   : > { %v696_v59 = vpack.c.b16 %v687_v48, %v686_v47  ;;  %v3706_v2 = vpack.c.b16 %v663_v53, %v662_v51  ;;  %v724_v48 = vsel %vm698_vm0, %v3577_v44, 0 }
 0x144   : > { %v588_v30 = vpop.f32.mrf.mxu2  ;;  %1809 = vrot.lane.b32.xlu0 %v3653_v60, %s3418_s6  ;;  %1811 = vrot.lane.b32.xlu1 %v3681_v29, %s3418_s6  ;;  %v493_v33 = vpop.f32.mrf.mxu0  ;;  %v742_v17 = vsel %vm698_vm0, %v696_v59, 0 }
 0x145   : > { %1457 = vrot.lane.b32.xlu2 %v3663_v11, %s3416_s21  ;;  %v542_v35 = vpop.f32.mrf.mxu1  ;;  %v623_v58 = vpack.c.bf16 %v588_v30, %v588_v30  ;;  %v736_v11 = vsel %vm698_vm0, %v3645_v52, 0  ;;  %v733_v52 = vsel %vm698_vm0, %v3629_v34, 0  ;;  %v730_v34 = vsel %vm698_vm0, %v3619_v25, 0 }
 0x146   : > { %v3693_v41 = vpack.c.bf16 %v542_v35, %v493_v33 }
 0x147   : > { %v3689_v36 = vpop.permute.xlu2 %1431  ;;  %v945_v9 = vunpack.c.l.b16 %v623_v58 }
 0x148   : > { %v688_v49 = vunpack.c.h.b16 %v3693_v41  ;;  %v664_v30 = vunpack.c.l.b16 %v3693_v41 }
 0x149   : > { %v954_v16 = vpack.c.b16 %v945_v9, %v944_v8 }
 0x14c   : > { %v591_v42 = vpop.f32.mrf.mxu2  ;;  %1320 = vrot.lane.b32.xlu1 %v3691_v37, %s3417_s26  ;;  %1071 = vrot.lane.b32.xlu0 %v3681_v29, %s3417_s26  ;;  %v495_v45 = vpop.f32.mrf.mxu0 }
 0x14d   : > { %1441 = vrot.lane.b32.xlu2 %v3681_v29, %s3416_s21  ;;  %v544_v46 = vpop.f32.mrf.mxu1  ;;  %v625_v55 = vpack.c.bf16 %v591_v42, %v591_v42 }
 0x14e   : > { %v626_v50 = vpack.c.bf16 %v544_v46, %v495_v45  ;;  %v727_v46 = vsel %vm698_vm0, %v3593_v62, 0 }
 0x14f   : > { %v3702_v54 = vpop.permute.xlu2 %1310  ;;  %v946_v4 = vunpack.c.l.b16 %v625_v55 }
 0x150   : > { %v689_v56 = vunpack.c.h.b16 %v626_v50  ;;  %v665_v31 = vunpack.c.l.b16 %v626_v50 }
 0x152   : > { %v3704_v1 = vpack.c.b16 %v689_v56, %v688_v49  ;;  %v3761_v35 = vpack.c.b16 %v665_v31, %v664_v30 }
 0x154   : > { %v593_v3 = vpop.f32.mrf.mxu2  ;;  %1829 = vrot.lane.b32.xlu1 %v696_v59, %s3418_s6  ;;  %1089 = vrot.lane.b32.xlu0 %v696_v59, %s3417_s26  ;;  %v745_v6 = vsel %vm698_vm0, %v3704_v1, 0 }
 0x155   : > { %v627_v5 = vpack.c.bf16 %v593_v3, %v593_v3  ;;  %1073 = vrot.lane.b32.xlu2 %v3706_v2, %s3417_s26  ;;  %747 = vmatpush.bf16.xpose.msra.mxu3 %v745_v6 }
 0x156   : > { %v3714_v12 = vpop.permute.xlu0 %1447  ;;  %v3731_v21 = vpop.permute.xlu1 %1077 }
 0x157   : > { %v947_v10 = vunpack.c.l.b16 %v627_v5  ;;  %v3716_v13 = vpop.permute.xlu2 %1819 }
 0x159   : > { %v3718_v14 = vpack.c.b16 %v947_v10, %v946_v4 }
 0x15b   : > { %964 = vmatpush.bf16.msrb.mxu0 %v3718_v14 }
 0x15c   : > { %1688 = vrot.lane.b32.xlu1 %v3671_v18, %s3416_s21  ;;  %1459 = vrot.lane.b32.xlu0 %v696_v59, %s3416_s21 }
 0x15d   : > { %2062 = vrot.lane.b32.xlu2 %v954_v16, %s3418_s6  ;;  %748 = vmatpush.bf16.xpose.msra.mxu3 %v742_v17 }
 0x15e   : > { %v3726_v19 = vpop.permute.xlu0 %1801  ;;  %v3752_v28 = vpop.permute.xlu1 %1817 }
 0x15f   : > { %965 = vmatpush.bf16.msrb.mxu0 %v954_v16  ;;  %v3728_v20 = vpop.permute.xlu2 %1803 }
 0x163   : > { %966 = vmatpush.bf16.msrb.mxu0 %v3691_v37 }
 0x164   : > { %1686 = vrot.lane.b32.xlu1 %v3655_v0, %s3416_s21  ;;  %1322 = vrot.lane.b32.xlu0 %v954_v16, %s3417_s26 }
 0x165   : > { %2060 = vrot.lane.b32.xlu2 %v3691_v37, %s3418_s6  ;;  %749 = vmatpush.bf16.xpose.msra.mxu3 %v739_v22 }
 0x166   : > { %v3741_v23 = vpop.permute.xlu0 %1079  ;;  %v3775_v39 = vpop.permute.xlu1 %1433 }
 0x167   : > { %967 = vmatpush.bf16.msrb.mxu0 %v3671_v18  ;;  %v3743_v27 = vpop.permute.xlu2 %1081 }
 0x16b   : > { %968 = vmatpush.bf16.msrb.mxu0 %v3655_v0 }
 0x16c   : > { %2050 = vrot.lane.b32.xlu1 %v3595_v63, %s3418_s6  ;;  %1091 = vrot.lane.b32.xlu0 %v3704_v1, %s3417_s26 }
 0x16d   : > { %1692 = vrot.lane.b32.xlu2 %v954_v16, %s3416_s21  ;;  %750 = vmatpush.bf16.xpose.msra.mxu3 %v736_v11 }
 0x16e   : > { %v3757_v32 = vpop.permute.xlu0 %1063  ;;  %v3791_v45 = vpop.permute.xlu1 %1312 }
 0x16f   : > { %969 = vmatpush.bf16.msrb.mxu0 %v3621_v26  ;;  %v3759_v33 = vpop.permute.xlu2 %1821 }
 0x173   : > { %970 = vmatpush.bf16.msrb.mxu0 %v3603_v7 }
 0x174   : > { %1443 = vrot.lane.b32.xlu0 %v3706_v2, %s3416_s21  ;;  %1075 = vrot.lane.b32.xlu1 %v3761_v35, %s3417_s26 }
 0x175   : > { %2058 = vrot.lane.b32.xlu2 %v3671_v18, %s3418_s6  ;;  %751 = vmatpush.bf16.xpose.msra.mxu3 %v733_v52 }
 0x176   : > { %v3773_v38 = vpop.permute.xlu0 %1449  ;;  %v3805_v47 = vpop.permute.xlu1 %1065 }
 0x177   : > { %971 = vmatpush.bf16.msrb.mxu0 %v3595_v63  ;;  %v3777_v41 = vpop.permute.xlu2 %1805 }
 0x178   : > { %4811 = vst [vmem:[#allocation12_spill] sm:$0xff] %v3777_v41 }
 0x17c   : > { %1813 = vrot.lane.b32.xlu0 %v3706_v2, %s3418_s6  ;;  %1445 = vrot.lane.b32.xlu1 %v3761_v35, %s3416_s21 }
 0x17d   : > { %1690 = vrot.lane.b32.xlu2 %v3691_v37, %s3416_s21  ;;  %752 = vmatpush.bf16.xpose.msra.mxu3 %v730_v34 }
 0x17e   : > { %v3787_v18 = vpop.permute.xlu0 %1314  ;;  %v3821_v49 = vpop.permute.xlu1 %1451 }
 0x17f   : > { %v3789_v42 = vpop.permute.xlu2 %1083 }
 0x184   : > { %2054 = vrot.lane.b32.xlu0 %v3621_v26, %s3418_s6  ;;  %2064 = vrot.lane.b32.xlu1 %v3718_v14, %s3418_s6 }
 0x185   : > { %2056 = vrot.lane.b32.xlu2 %v3655_v0, %s3418_s6  ;;  %753 = vmatpush.bf16.xpose.msra.mxu3 %v727_v46 }
 0x186   : > { %v3801_v25 = vpop.permute.xlu0 %1823  ;;  %v3835_v51 = vpop.permute.xlu1 %1435 }
 0x187   : > { %v3803_v37 = vpop.permute.xlu2 %1067 }
 0x18c   : > { %1682 = vrot.lane.b32.xlu0 %v3603_v7, %s3416_s21 }
 0x18d   : > { %2052 = vrot.lane.b32.xlu2 %v3603_v7, %s3418_s6  ;;  %754 = vmatpush.bf16.xpose.msra.mxu3 %v724_v48 }
 0x18e   : > { %v3813_v62 = vpop.permute.xlu0 %1437 }
 0x18f   : > { %v3815_v0 = vpop.permute.xlu2 %1455 }
 0x194   : > { %1461 = vrot.lane.b32.xlu0 %v3704_v1, %s3416_s21  ;;  %2800 = vmatmul.msk.bf16.vlgmr.msra.gmra.mxu3 %vm698_vm0, %v3575_v43 }
 0x195   : > { %1684 = vrot.lane.b32.xlu2 %v3621_v26, %s3416_s21 }
 0x196   : > { %v3825_v44 = vpop.permute.xlu0 %1807 }
 0x197   : > { %4812 = vst [vmem:[#allocation13_spill] sm:$0xff] %v3825_v44  ;;  %v3827_v50 = vpop.permute.xlu2 %1318 }
 0x19c   : > { %1324 = vrot.lane.b32.xlu0 %v3718_v14, %s3417_s26 }
 0x19d   : > { %1680 = vrot.lane.b32.xlu2 %v3595_v63, %s3416_s21  ;;  %v3849_v63 = vpop.permute.xlu1 %1453 }
 0x19e   : > { %v3833_v7 = vpop.permute.xlu0 %1316 }
 0x19f   : > { %v3837_v43 = vpop.permute.xlu2 %1457 }
 0x1a4   : > { %1694 = vrot.lane.b32.xlu0 %v3718_v14, %s3416_s21  ;;  %2801 = vmatmul.msk.bf16.gmra.mxu3 %vm698_vm0, %v3591_v61 }
 0x1a5   : > { %1831 = vrot.lane.b32.xlu2 %v3704_v1, %s3418_s6  ;;  %v1086_v57 = vpop.permute.xlu1 %1085 }
 0x1a6   : > { %v3845_v26 = vpop.permute.xlu0 %1825  ;;  %v1130_v48 = vsel %vm698_vm0, %v1086_v57, 0  ;;  %v1124_v57 = vsel %vm698_vm0, %v3743_v27, 0 }
 0x1a7   : > { %v3847_v53 = vpop.permute.xlu2 %1441 }
 0x1ad   : > { %1815 = vrot.lane.b32.xlu2 %v3761_v35, %s3418_s6  ;;  %v3863_v59 = vpop.permute.xlu1 %1069 }
 0x1ae   : > { %v3853_v55 = vpop.permute.xlu0 %1439 }
 0x1af   : > { %v3855_v56 = vpop.permute.xlu2 %1073 }
 0x1b4   : > { %2802 = vmatmul.msk.bf16.gmra.mxu3 %vm698_vm0, %v3611_v15 }
 0x1b5   : > { %v1088_v5 = vpop.permute.xlu1 %1087 }
 0x1b6   : > { %v3859_v61 = vpop.permute.xlu0 %1809  ;;  %v1133_v34 = vsel %vm698_vm0, %v1088_v5, 0 }
 0x1b7   : > { %4813 = vst [vmem:[#allocation14_spill] sm:$0xff] %v3859_v61  ;;  %v3861_v58 = vpop.permute.xlu2 %2062 }
 0x1bd   : > { %v3873_v9 = vpop.permute.xlu1 %1827 }
 0x1be   : > { %v3865_v1 = vpop.permute.xlu0 %1071 }
 0x1bf   : > { %v3869_v3 = vpop.permute.xlu2 %2060 }
 0x1c4   : > { %2803 = vmatmul.msk.bf16.gmra.mxu3 %vm698_vm0, %v3637_v40 }
 0x1c5   : > { %v3879_v14 = vpop.permute.xlu1 %1811 }
 0x1c6   : > { %v1090_v4 = vpop.permute.xlu0 %1089  ;;  %4814 = vst [vmem:[#allocation15_spill] sm:$0xff] %v3879_v14 }
 0x1c7   : > { %v3871_v8 = vpop.permute.xlu2 %1692  ;;  %v1136_v30 = vsel %vm698_vm0, %v1090_v4, 0 }
 0x1cd   : > { %v1321_v22 = vpop.permute.xlu1 %1320 }
 0x1ce   : > { %v1460_v6 = vpop.permute.xlu0 %1459 }
 0x1cf   : > { %v3877_v10 = vpop.permute.xlu2 %2058  ;;  %v1506_v27 = vsel %vm698_vm0, %v1460_v6, 0 }
 0x1d4   : > { %2804 = vmatmul.msk.bf16.gmra.mxu3 %vm698_vm0, %v3653_v60 }
 0x1d5   : > { %v1830_v52 = vpop.permute.xlu1 %1829 }
 0x1d6   : > { %v1323_v15 = vpop.permute.xlu0 %1322 }
 0x1d7   : > { %v3882_v17 = vpop.permute.xlu2 %1690 }
 0x1dd   : > { %v1689_v4 = vpop.permute.xlu1 %1688 }
 0x1de   : > { %v1092_v16 = vpop.permute.xlu0 %1091 }
 0x1df   : > { %v1139_v40 = vsel %vm698_vm0, %v1092_v16, 0  ;;  %v3889_v60 = vpop.permute.xlu2 %2056 }
 0x1e0   : > { %1141 = vmatpush.bf16.xpose.msrb.mxu1 %v1139_v40  ;;  %v1127_v40 = vsel %vm698_vm0, %v3789_v42, 0 }
 0x1e4   : > { %2805 = vmatmul.msk.bf16.gmra.mxu3 %vm698_vm0, %v3681_v29 }
 0x1e6   : > { %v3886_v11 = vpop.permute.xlu0 %1443 }
 0x1e7   : > { %v3898_v46 = vpop.permute.xlu2 %2052 }
 0x1e8   : > { %1142 = vmatpush.bf16.xpose.msrb.mxu1 %v1136_v30  ;;  %v1687_v30 = vpop.permute.xlu1 %1686 }
 0x1ee   : > { %v3891_v31 = vpop.permute.xlu0 %1813 }
 0x1ef   : > { %4815 = vst [vmem:[#allocation16_spill] sm:$0xff] %v3891_v31  ;;  %v3906_v5 = vpop.permute.xlu2 %1684 }
 0x1f0   : > { %1143 = vmatpush.bf16.xpose.msrb.mxu1 %v1133_v34 }
 0x1f4   : > { %2806 = vmatmul.msk.bf16.gmra.mxu3 %vm698_vm0, %v3706_v2 }
 0x1f6   : > { %v3896_v29 = vpop.permute.xlu0 %2054 }
 0x1f7   : > { %v3917_v42 = vpop.permute.xlu2 %1680 }
 0x1f8   : > { %1144 = vmatpush.bf16.xpose.msrb.mxu1 %v1130_v48  ;;  %v628_v48 = vld [vmem:[%s264_s13] sm:$0x1] }
 0x1f9   : > { %vm629_vm1 = vcmp.ne.s32.totalorder %v628_v48, 0 }
 0x1fe   : > { %v3901_v16 = vpop.permute.xlu0 %1682 }
 0x1ff   : > { %v1832_v14 = vpop.permute.xlu2 %1831 }
 0x200   : > { %1145 = vmatpush.bf16.xpose.msrb.mxu1 %v1127_v40  ;;  %v3919_v40 = vpop.permute.xlu1 %2050  ;;  %v1879_v6 = vsel %vm698_vm0, %v1832_v14, 0  ;;  %v1858_v14 = vsel %vm698_vm0, %v3752_v28, 0 }
 0x204   : > { %2807 = vmatmul.msk.bf16.gmra.mxu3 %vm698_vm0, %v3761_v35  ;;  %v1121_v35 = vsel %vm698_vm0, %v3741_v23, 0  ;;  %v1503_v23 = vsel %vm698_vm0, %v3837_v43, 0 }
 0x206   : > { %v1462_v2 = vpop.permute.xlu0 %1461 }
 0x207   : > { %v1509_v34 = vsel %vm698_vm0, %v1462_v2, 0  ;;  %v3419_v2 = vmov -1e+30  }
 0x208   : > { %1146 = vmatpush.bf16.xpose.msrb.mxu1 %v1124_v57  ;;  %1511 = vmatpush.bf16.xpose.msrb.mxu3 %v1509_v34  ;;  %v630_v57 = vsel %vm629_vm1, 0.0, %v3419_v2  ;;  %v3926_v44 = vpop.permute.xlu1 %1075 }
 0x209   : > { %v3924_v34 = vperm.slane %v630_v57, 0 }
 0x20e   : > { %v1325_v31 = vpop.permute.xlu0 %1324 }
 0x20f   : > { %1334 = vmatpush.bf16.msrb.mxu2 %v1325_v31  ;;  %v1118_v31 = vsel %vm698_vm0, %v3731_v21, 0  ;;  %v1500_v21 = vsel %vm698_vm0, %v3815_v0, 0  ;;  %v1497_v0 = vsel %vm698_vm0, %v3849_v63, 0  ;;  %v1870_v63 = vsel %vm698_vm0, %v3845_v26, 0 }
 0x210   : > { %1147 = vmatpush.bf16.xpose.msrb.mxu1 %v1121_v35  ;;  %1512 = vmatpush.bf16.xpose.msrb.mxu3 %v1506_v27  ;;  %v1867_v26 = vsel %vm698_vm0, %v3801_v25, 0 }
 0x213   : > { %1335 = vmatpush.bf16.msrb.mxu2 %v1323_v15 }
 0x216   : > { %v1695_v61 = vpop.permute.xlu0 %1694 }
 0x217   : > { %v756_v41 = vpop.f32.mrf.mxu3  ;;  %1336 = vmatpush.bf16.msrb.mxu2 %v1321_v22  ;;  %1704 = vmatpush.bf16.msra.mxu0 %v1695_v61 }
 0x218   : > { %v3934_v48 = vadd.f32 %v756_v41, %v3924_v34  ;;  %1148 = vmatpush.bf16.xpose.msrb.mxu1 %v1118_v31  ;;  %1513 = vmatpush.bf16.xpose.msrb.mxu3 %v1503_v23  ;;  %v1876_v41 = vsel %vm698_vm0, %v1830_v52, 0 }
 0x21a   : > { %796 = vmax.xlane.f32.xlu0 %v3934_v48 }
 0x21b   : > { %1337 = vmatpush.bf16.msrb.mxu2 %v3827_v50  ;;  %1705 = vmatpush.bf16.msra.mxu0 %v3871_v8  ;;  %v3949_v50 = vpop.permute.xlu1 %1445  ;;  %v1873_v8 = vsel %vm698_vm0, %v3873_v9, 0 }
 0x21f   : > { %v758_v61 = vpop.f32.mrf.mxu3  ;;  %2808 = vmatmul.msk.bf16.vlgmr.msrb.gmra.mxu1 %vm698_vm0, %v3679_v24  ;;  %1338 = vmatpush.bf16.msrb.mxu2 %v3833_v7 }
 0x220   : > { %1881 = vmatpush.bf16.xpose.msra.mxu1 %v1879_v6  ;;  %1706 = vmatpush.bf16.msra.mxu0 %v3882_v17  ;;  %v3947_v43 = vadd.f32 %v758_v61, %v3924_v34 }
 0x221   : > { %1514 = vmatpush.bf16.xpose.msrb.mxu3 %v1500_v21 }
 0x222   : > { %798 = vmax.xlane.f32.xlu2 %v3947_v43 }
 0x223   : > { %1339 = vmatpush.bf16.msrb.mxu2 %v3787_v18  ;;  %v2065_v15 = vpop.permute.xlu1 %2064 }
 0x224   : > { %1707 = vmatpush.bf16.msra.mxu0 %v1689_v4  ;;  %v4055_v4 = vpop.permute.xlu2 %1815 }
 0x227   : > { %v761_v24 = vpop.f32.mrf.mxu3  ;;  %1340 = vmatpush.bf16.msrb.mxu2 %v3791_v45  ;;  %v1494_v45 = vsel %vm698_vm0, %v3821_v49, 0 }
 0x228   : > { %1882 = vmatpush.bf16.xpose.msra.mxu1 %v1876_v41  ;;  %v3957_v7 = vadd.f32 %v761_v24, %v3924_v34  ;;  %1708 = vmatpush.bf16.msra.mxu0 %v1687_v30 }
 0x229   : > { %1515 = vmatpush.bf16.xpose.msrb.mxu3 %v1497_v0 }
 0x22a   : > { %800 = vmax.xlane.f32.xlu0 %v3957_v7 }
 0x22b   : > { %1341 = vmatpush.bf16.msrb.mxu2 %v3702_v54 }
 0x22c   : > { %1709 = vmatpush.bf16.msra.mxu0 %v3906_v5 }
 0x22f   : > { %2074 = vmatpush.bf16.msra.mxu2 %v2065_v15  ;;  %v763_v18 = vpop.f32.mrf.mxu3  ;;  %2809 = vmatmul.msk.bf16.gmra.mxu1 %vm698_vm0, %v3757_v32  ;;  %v1491_v32 = vsel %vm698_vm0, %v3773_v38, 0  ;;  %v1488_v38 = vsel %vm698_vm0, %v3714_v12, 0 }
 0x230   : > { %1883 = vmatpush.bf16.xpose.msra.mxu1 %v1873_v8  ;;  %1710 = vmatpush.bf16.msra.mxu0 %v3901_v16  ;;  %v3972_v9 = vadd.f32 %v763_v18, %v3924_v34 }
 0x231   : > { %1516 = vmatpush.bf16.xpose.msrb.mxu3 %v1494_v45 }
 0x232   : > { %802 = vmax.xlane.f32.xlu1 %v3972_v9 }
 0x233   : > { %2075 = vmatpush.bf16.msra.mxu2 %v3861_v58 }
 0x234   : > { %1711 = vmatpush.bf16.msra.mxu0 %v3917_v42 }
 0x237   : > { %2076 = vmatpush.bf16.msra.mxu2 %v3869_v3  ;;  %v766_v54 = vpop.f32.mrf.mxu3  ;;  %v1864_v3 = vsel %vm698_vm0, %v3759_v33, 0  ;;  %v1861_v33 = vsel %vm698_vm0, %v3716_v13, 0 }
 0x238   : > { %1884 = vmatpush.bf16.xpose.msra.mxu1 %v1870_v63  ;;  %v3981_v49 = vadd.f32 %v766_v54, %v3924_v34 }
 0x239   : > { %1517 = vmatpush.bf16.xpose.msrb.mxu3 %v1491_v32 }
 0x23a   : > { %804 = vmax.xlane.f32.xlu0 %v3981_v49 }
 0x23b   : > { %2077 = vmatpush.bf16.msra.mxu2 %v3877_v10 }
 0x23f   : > { %2078 = vmatpush.bf16.msra.mxu2 %v3889_v60  ;;  %v768_v58 = vpop.f32.mrf.mxu3  ;;  %2810 = vmatmul.msk.bf16.gmra.mxu1 %vm698_vm0, %v3805_v47 }
 0x240   : > { %1885 = vmatpush.bf16.xpose.msra.mxu1 %v1867_v26  ;;  %v3995_v25 = vadd.f32 %v768_v58, %v3924_v34 }
 0x241   : > { %1518 = vmatpush.bf16.xpose.msrb.mxu3 %v1488_v38  ;;  %v4818_v38 = vld [vmem:[#allocation12_spill] sm:$0xff] }
 0x242   : > { %806 = vmax.xlane.f32.xlu2 %v3995_v25 }
 0x243   : > { %2079 = vmatpush.bf16.msra.mxu2 %v3896_v29 }
 0x247   : > { %2080 = vmatpush.bf16.msra.mxu2 %v3898_v46  ;;  %v771_v10 = vpop.f32.mrf.mxu3 }
 0x248   : > { %1886 = vmatpush.bf16.xpose.msra.mxu1 %v1864_v3  ;;  %2816 = vmatmul.msk.bf16.vlgmr.msrb.gmra.mxu3 %vm698_vm0, %v3689_v36  ;;  %v4003_v12 = vadd.f32 %v771_v10, %v3924_v34 }
 0x24a   : > { %808 = vmax.xlane.f32.xlu2 %v4003_v12 }
 0x24b   : > { %2081 = vmatpush.bf16.msra.mxu2 %v3919_v40 }
 0x24f   : > { %v773_v47 = vpop.f32.mrf.mxu3  ;;  %2811 = vmatmul.msk.bf16.gmra.mxu1 %vm698_vm0, %v3803_v37 }
 0x250   : > { %1887 = vmatpush.bf16.xpose.msra.mxu1 %v1861_v33  ;;  %v4014_v36 = vadd.f32 %v773_v47, %v3924_v34 }
 0x252   : > { %810 = vmax.xlane.f32.xlu0 %v4014_v36 }
 0x257   : > { %v776_v17 = vpop.f32.mrf.mxu3 }
 0x258   : > { %1888 = vmatpush.bf16.xpose.msra.mxu1 %v1858_v14  ;;  %2817 = vmatmul.msk.bf16.gmra.mxu3 %vm698_vm0, %v3775_v39  ;;  %v4020_v13 = vadd.f32 %v776_v17, %v3924_v34 }
 0x25a   : > { %812 = vmax.xlane.f32.xlu1 %v4020_v13 }
 0x25f   : > { %v778_v22 = vpop.f32.mrf.mxu3  ;;  %2812 = vmatmul.msk.bf16.gmra.mxu1 %vm698_vm0, %v3863_v59 }
 0x260   : > { %v4026_v28 = vadd.f32 %v778_v22, %v3924_v34 }
 0x262   : > { %814 = vmax.xlane.f32.xlu2 %v4026_v28 }
 0x267   : > { %v781_v37 = vpop.f32.mrf.mxu3 }
 0x268   : > { %2818 = vmatmul.msk.bf16.gmra.mxu3 %vm698_vm0, %v3835_v51  ;;  %v4032_v39 = vadd.f32 %v781_v37, %v3924_v34 }
 0x26a   : > { %816 = vmax.xlane.f32.xlu0 %v4032_v39 }
 0x26f   : > { %v783_v60 = vpop.f32.mrf.mxu3  ;;  %2813 = vmatmul.msk.bf16.gmra.mxu1 %vm698_vm0, %v3865_v1 }
 0x270   : > { %v4038_v59 = vadd.f32 %v783_v60, %v3924_v34 }
 0x272   : > { %818 = vmax.xlane.f32.xlu0 %v4038_v59 }
 0x277   : > { %v786_v52 = vpop.f32.mrf.mxu3 }
 0x278   : > { %2819 = vmatmul.msk.bf16.gmra.mxu3 %vm698_vm0, %v3813_v62  ;;  %v4044_v51 = vadd.f32 %v786_v52, %v3924_v34 }
 0x27a   : > { %820 = vmax.xlane.f32.xlu2 %v4044_v51 }
 0x27f   : > { %v788_v29 = vpop.f32.mrf.mxu3  ;;  %2814 = vmatmul.msk.bf16.gmra.mxu1 %vm698_vm0, %v3855_v56 }
 0x280   : > { %v4050_v1 = vadd.f32 %v788_v29, %v3924_v34  ;;  %v4819_v29 = vld [vmem:[#allocation13_spill] sm:$0xff] }
 0x282   : > { %822 = vmax.xlane.f32.xlu0 %v4050_v1 }
 0x287   : > { %v791_v46 = vpop.f32.mrf.mxu3 }
 0x288   : > { %2820 = vmatmul.msk.bf16.gmra.mxu3 %vm698_vm0, %v3853_v55  ;;  %v4084_v21 = vadd.f32 %v791_v46, %v3924_v34 }
 0x28d   : > { %v797_v62 = vpop.xlane.xlu0 %796 }
 0x28e   : > { %v828_v56 = vsub.f32 %v3934_v48, %v797_v62 }
 0x28f   : > { %v793_v16 = vpop.f32.mrf.mxu3  ;;  %2815 = vmatmul.msk.bf16.gmra.mxu1 %vm698_vm0, %v3926_v44 }
 0x290   : > { %v4060_v5 = vadd.f32 %v793_v16, %v3924_v34  ;;  %v844_v30 = vmul.f32 1.442695, %v828_v56 }
 0x292   : > { %826 = vmax.xlane.f32.xlu0 %v4060_v5  ;;  %2990 = vpow2.f32 %v844_v30 }
 0x295   : > { %v799_v42 = vpop.xlane.xlu2 %798 }
 0x296   : > { %v829_v40 = vsub.f32 %v3947_v43, %v799_v42 }
 0x298   : > { %2821 = vmatmul.msk.bf16.gmra.mxu3 %vm698_vm0, %v3847_v53  ;;  %v846_v55 = vmul.f32 1.442695, %v829_v40  ;;  %v4070_v2 = vpop.eup %2990 }
 0x299   : > { %4816 = vst [vmem:[#allocation17_spill] sm:$0xff] %v4070_v2 }
 0x29a   : > { %2992 = vpow2.f32 %v846_v55 }
 0x29c   : > { %v1150_v35 = vpop.f32.mrf.mxu1 }
 0x29d   : > { %v4068_v44 = vadd.f32 %v1150_v35, %v3924_v34  ;;  %v801_v27 = vpop.xlane.xlu0 %800 }
 0x29e   : > { %v830_v31 = vsub.f32 %v3957_v7, %v801_v27 }
 0x29f   : > { %1190 = vmax.xlane.f32.xlu1 %v4068_v44  ;;  %2824 = vmatmul.msk.bf16.vlgmr.msra.gmra.mxu1 %vm698_vm0, %v3726_v19 }
 0x2a0   : > { %v4075_v57 = vpop.eup %2992  ;;  %v848_v6 = vmul.f32 1.442695, %v830_v31 }
 0x2a1   : > { %4817 = vst [vmem:[#allocation18_spill] sm:$0xff] %v4075_v57  ;;  %v908_v53 = vpack.c.bf16 %v4075_v57, %v4070_v2 }
 0x2a2   : > { %2994 = vpow2.f32 %v848_v6  ;;  %v4820_v6 = vld [vmem:[#allocation14_spill] sm:$0xff] }
 0x2a3   : > { %972 = vmatmul.bf16.vlgmr.msrb.gmra.mxu0 %v908_v53 }
 0x2a4   : > { %v1152_v23 = vpop.f32.mrf.mxu1 }
 0x2a5   : > { %v803_v48 = vpop.xlane.xlu1 %802  ;;  %v4081_v61 = vadd.f32 %v1152_v23, %v3924_v34 }
 0x2a6   : > { %v831_v41 = vsub.f32 %v3972_v9, %v803_v48 }
 0x2a7   : > { %1192 = vmax.xlane.f32.xlu2 %v4081_v61  ;;  %824 = vmax.xlane.f32.xlu1 %v4084_v21 }
 0x2a8   : > { %2822 = vmatmul.msk.bf16.gmra.mxu3 %vm698_vm0, %v3886_v11  ;;  %v850_v19 = vmul.f32 1.442695, %v831_v41  ;;  %v2995_v7 = vpop.eup %2994 }
 0x2aa   : > { %2996 = vpow2.f32 %v850_v19 }
 0x2ac   : > { %v1155_v43 = vpop.f32.mrf.mxu1 }
 0x2ad   : > { %v4092_v24 = vadd.f32 %v1155_v43, %v3924_v34  ;;  %v805_v0 = vpop.xlane.xlu0 %804 }
 0x2ae   : > { %v832_v15 = vsub.f32 %v3981_v49, %v805_v0 }
 0x2af   : > { %2825 = vmatmul.msk.bf16.gmra.mxu1 %vm698_vm0, %v3728_v20  ;;  %1194 = vmax.xlane.f32.xlu1 %v4092_v24 }
 0x2b0   : > { %v2997_v8 = vpop.eup %2996  ;;  %v852_v45 = vmul.f32 1.442695, %v832_v15 }
 0x2b1   : > { %v909_v11 = vpack.c.bf16 %v2997_v8, %v2995_v7 }
 0x2b2   : > { %2998 = vpow2.f32 %v852_v45 }
 0x2b3   : > { %977 = vmatmul.bf16.gmra.mxu0 %v909_v11 }
 0x2b4   : > { %v1157_v18 = vpop.f32.mrf.mxu1 }
 0x2b5   : > { %v807_v63 = vpop.xlane.xlu2 %806  ;;  %v4099_v9 = vadd.f32 %v1157_v18, %v3924_v34 }
 0x2b6   : > { %v833_v54 = vsub.f32 %v3995_v25, %v807_v63 }
 0x2b7   : > { %1196 = vmax.xlane.f32.xlu2 %v4099_v9 }
 0x2b8   : > { %2823 = vmatmul.msk.bf16.gmra.mxu3 %vm698_vm0, %v3949_v50  ;;  %v854_v20 = vmul.f32 1.442695, %v833_v54  ;;  %v4108_v58 = vpop.eup %2998 }
 0x2ba   : > { %3000 = vpow2.f32 %v854_v20 }
 0x2bc   : > { %v1160_v32 = vpop.f32.mrf.mxu1 }
 0x2bd   : > { %v4106_v49 = vadd.f32 %v1160_v32, %v3924_v34  ;;  %v809_v26 = vpop.xlane.xlu2 %808 }
 0x2be   : > { %v834_v25 = vsub.f32 %v4003_v12, %v809_v26  ;;  %v4821_v26 = vld [vmem:[#allocation15_spill] sm:$0xff] }
 0x2bf   : > { %1198 = vmax.xlane.f32.xlu2 %v4106_v49  ;;  %2826 = vmatmul.msk.bf16.gmra.mxu1 %vm698_vm0, %v4818_v38 }
 0x2c0   : > { %v3001_v3 = vpop.eup %3000  ;;  %v856_v33 = vmul.f32 1.442695, %v834_v25 }
 0x2c1   : > { %v910_v50 = vpack.c.bf16 %v3001_v3, %v4108_v58 }
 0x2c2   : > { %3002 = vpow2.f32 %v856_v33 }
 0x2c3   : > { %982 = vmatmul.bf16.gmra.mxu0 %v910_v50 }
 0x2c4   : > { %v1162_v10 = vpop.f32.mrf.mxu1 }
 0x2c5   : > { %v811_v47 = vpop.xlane.xlu0 %810 }
 0x2c6   : > { %v835_v14 = vsub.f32 %v4014_v36, %v811_v47 }
 0x2c7   : > { %880 = vadd.xlane.f32.xlu2 %v2995_v7 }
 0x2c8   : > { %v858_v17 = vmul.f32 1.442695, %v835_v14  ;;  %v4120_v52 = vpop.eup %3002 }
 0x2ca   : > { %3004 = vpow2.f32 %v858_v17 }
 0x2cb   : > { %v1520_v22 = vpop.f32.mrf.mxu3 }
 0x2cc   : > { %v4117_v37 = vadd.f32 %v1520_v22, %v3924_v34  ;;  %v1165_v60 = vpop.f32.mrf.mxu1 }
 0x2cd   : > { %v813_v12 = vpop.xlane.xlu1 %812  ;;  %v4158_v63 = vadd.f32 %v1165_v60, %v3924_v34 }
 0x2ce   : > { %1560 = vmax.xlane.f32.xlu1 %v4117_v37  ;;  %v836_v36 = vsub.f32 %v4020_v13, %v813_v12 }
 0x2cf   : > { %2827 = vmatmul.msk.bf16.gmra.mxu1 %vm698_vm0, %v4819_v29  ;;  %v4822_v29 = vld [vmem:[#allocation16_spill] sm:$0xff] }
 0x2d0   : > { %v3005_v46 = vpop.eup %3004  ;;  %v860_v42 = vmul.f32 1.442695, %v836_v36 }
 0x2d1   : > { %v911_v62 = vpack.c.bf16 %v3005_v46, %v4120_v52 }
 0x2d2   : > { %3006 = vpow2.f32 %v860_v42 }
 0x2d3   : > { %v1522_v16 = vpop.f32.mrf.mxu3  ;;  %987 = vmatmul.bf16.gmra.mxu0 %v911_v62 }
 0x2d4   : > { %v4127_v56 = vadd.f32 %v1522_v16, %v3924_v34  ;;  %v1167_v30 = vpop.f32.mrf.mxu1 }
 0x2d5   : > { %v815_v40 = vpop.xlane.xlu2 %814  ;;  %v4148_v0 = vadd.f32 %v1167_v30, %v3924_v34 }
 0x2d6   : > { %1562 = vmax.xlane.f32.xlu0 %v4127_v56  ;;  %v837_v55 = vsub.f32 %v4026_v28, %v815_v40 }
 0x2d8   : > { %v862_v35 = vmul.f32 1.442695, %v837_v55  ;;  %v4135_v23 = vpop.eup %3006 }
 0x2da   : > { %3008 = vpow2.f32 %v862_v35 }
 0x2db   : > { %v1525_v27 = vpop.f32.mrf.mxu3 }
 0x2dc   : > { %v4132_v13 = vadd.f32 %v1525_v27, %v3924_v34  ;;  %v1170_v31 = vpop.f32.mrf.mxu1 }
 0x2dd   : > { %v817_v53 = vpop.xlane.xlu0 %816 }
 0x2de   : > { %882 = vadd.xlane.f32.xlu0 %v2997_v8  ;;  %1564 = vmax.xlane.f32.xlu1 %v4132_v13  ;;  %v838_v28 = vsub.f32 %v4032_v39, %v817_v53  ;;  %v4151_v8 = vadd.f32 %v1162_v10, %v3924_v34 }
 0x2df   : > { %2828 = vmatmul.msk.bf16.gmra.mxu1 %vm698_vm0, %v4820_v6 }
 0x2e0   : > { %v4139_v48 = vpop.eup %3008  ;;  %v864_v15 = vmul.f32 1.442695, %v838_v28 }
 0x2e1   : > { %v912_v41 = vpack.c.bf16 %v4139_v48, %v4135_v23 }
 0x2e2   : > { %3010 = vpow2.f32 %v864_v15 }
 0x2e3   : > { %v1527_v19 = vpop.f32.mrf.mxu3  ;;  %992 = vmatmul.bf16.gmra.mxu0 %v912_v41 }
 0x2e4   : > { %v4145_v43 = vadd.f32 %v1527_v19, %v3924_v34  ;;  %v1172_v7 = vpop.f32.mrf.mxu1 }
 0x2e5   : > { %v819_v11 = vpop.xlane.xlu0 %818  ;;  %v4202_v42 = vadd.f32 %v1172_v7, %v3924_v34 }
 0x2e6   : > { %1566 = vmax.xlane.f32.xlu2 %v4145_v43  ;;  %1204 = vmax.xlane.f32.xlu0 %v4148_v0  ;;  %v839_v39 = vsub.f32 %v4038_v59, %v819_v11 }
 0x2e7   : > { %1200 = vmax.xlane.f32.xlu1 %v4151_v8 }
 0x2e8   : > { %v866_v18 = vmul.f32 1.442695, %v839_v39  ;;  %v4161_v32 = vpop.eup %3010 }
 0x2ea   : > { %3012 = vpow2.f32 %v866_v18 }
 0x2eb   : > { %v1530_v45 = vpop.f32.mrf.mxu3 }
 0x2ec   : > { %v1175_v54 = vpop.f32.mrf.mxu1  ;;  %v4177_v22 = vadd.f32 %v1530_v45, %v3924_v34 }
 0x2ed   : > { %v821_v20 = vpop.xlane.xlu2 %820  ;;  %v4205_v40 = vadd.f32 %v1175_v54, %v3924_v34 }
 0x2ee   : > { %886 = vadd.xlane.f32.xlu2 %v3001_v3  ;;  %890 = vadd.xlane.f32.xlu0 %v3005_v46  ;;  %v840_v38 = vsub.f32 %v4044_v51, %v821_v20 }
 0x2ef   : > { %1202 = vmax.xlane.f32.xlu1 %v4158_v63  ;;  %2829 = vmatmul.msk.bf16.gmra.mxu1 %vm698_vm0, %v4821_v26 }
 0x2f0   : > { %v4165_v59 = vpop.eup %3012  ;;  %v868_v33 = vmul.f32 1.442695, %v840_v38 }
 0x2f1   : > { %v913_v25 = vpack.c.bf16 %v4165_v59, %v4161_v32 }
 0x2f2   : > { %3014 = vpow2.f32 %v868_v33 }
 0x2f3   : > { %v1532_v50 = vpop.f32.mrf.mxu3  ;;  %997 = vmatmul.bf16.gmra.mxu0 %v913_v25 }
 0x2f4   : > { %v4171_v3 = vadd.f32 %v1532_v50, %v3924_v34  ;;  %v1177_v10 = vpop.f32.mrf.mxu1 }
 0x2f5   : > { %v823_v47 = vpop.xlane.xlu0 %822  ;;  %v4224_v11 = vadd.f32 %v1177_v10, %v3924_v34 }
 0x2f6   : > { %1570 = vmax.xlane.f32.xlu2 %v4171_v3  ;;  %v841_v14 = vsub.f32 %v4050_v1, %v823_v47 }
 0x2f7   : > { %884 = vadd.xlane.f32.xlu1 %v4108_v58 }
 0x2f8   : > { %v870_v17 = vmul.f32 1.442695, %v841_v14  ;;  %v4181_v12 = vpop.eup %3014 }
 0x2fa   : > { %3016 = vpow2.f32 %v870_v17 }
 0x2fb   : > { %v1535_v51 = vpop.f32.mrf.mxu3 }
 0x2fc   : > { %v1180_v60 = vpop.f32.mrf.mxu1  ;;  %v4190_v36 = vadd.f32 %v1535_v51, %v3924_v34 }
 0x2fe   : > { %888 = vadd.xlane.f32.xlu2 %v4120_v52  ;;  %v4196_v52 = vadd.f32 %v1170_v31, %v3924_v34 }
 0x2ff   : > { %1568 = vmax.xlane.f32.xlu1 %v4177_v22  ;;  %2830 = vmatmul.msk.bf16.gmra.mxu1 %vm698_vm0, %v4822_v29 }
 0x300   : > { %v4185_v1 = vpop.eup %3016 }
 0x301   : > { %v914_v58 = vpack.c.bf16 %v4185_v1, %v4181_v12 }
 0x303   : > { %v1537_v46 = vpop.f32.mrf.mxu3  ;;  %1002 = vmatmul.bf16.gmra.mxu0 %v914_v58 }
 0x304   : > { %v4193_v62 = vadd.f32 %v1537_v46, %v3924_v34  ;;  %v1182_v16 = vpop.f32.mrf.mxu1 }
 0x305   : > { %v827_v35 = vpop.xlane.xlu0 %826  ;;  %v4244_v50 = vadd.f32 %v1182_v16, %v3924_v34 }
 0x306   : > { %1572 = vmax.xlane.f32.xlu2 %v4190_v36  ;;  %1574 = vmax.xlane.f32.xlu0 %v4193_v62  ;;  %v843_v28 = vsub.f32 %v4060_v5, %v827_v35 }
 0x307   : > { %1206 = vmax.xlane.f32.xlu1 %v4196_v52 }
 0x30b   : > { %v1540_v30 = vpop.f32.mrf.mxu3 }
 0x30c   : > { %v1185_v55 = vpop.f32.mrf.mxu1  ;;  %v4213_v53 = vadd.f32 %v1540_v30, %v3924_v34 }
 0x30d   : > { %v4259_v46 = vadd.f32 %v1185_v55, %v3924_v34 }
 0x30e   : > { %1208 = vmax.xlane.f32.xlu2 %v4202_v42  ;;  %1210 = vmax.xlane.f32.xlu0 %v4205_v40 }
 0x30f   : > { %894 = vadd.xlane.f32.xlu1 %v4139_v48  ;;  %2831 = vmatmul.msk.bf16.gmra.mxu1 %vm698_vm0, %v4055_v4  ;;  %v874_v4 = vmul.f32 1.442695, %v843_v28 }
 0x311   : > { %3018 = vpow2.f32 %v874_v4 }
 0x312   : > { %v1191_v27 = vpop.xlane.xlu1 %1190 }
 0x313   : > { %v1542_v31 = vpop.f32.mrf.mxu3  ;;  %v1222_v48 = vsub.f32 %v4068_v44, %v1191_v27 }
 0x314   : > { %v4216_v6 = vadd.f32 %v1542_v31, %v3924_v34  ;;  %v1187_v41 = vpop.f32.mrf.mxu1 }
 0x315   : > { %v1238_v19 = vmul.f32 1.442695, %v1222_v48  ;;  %v4262_v16 = vadd.f32 %v1187_v41, %v3924_v34 }
 0x316   : > { %892 = vadd.xlane.f32.xlu2 %v4135_v23  ;;  %1576 = vmax.xlane.f32.xlu0 %v4213_v53 }
 0x317   : > { %1578 = vmax.xlane.f32.xlu1 %v4216_v6  ;;  %3020 = vpow2.f32 %v1238_v19  ;;  %v4233_v26 = vpop.eup %3018 }
 0x31a   : > { %v1193_v7 = vpop.xlane.xlu2 %1192  ;;  %v825_v18 = vpop.xlane.xlu1 %824 }
 0x31b   : > { %v1545_v15 = vpop.f32.mrf.mxu3  ;;  %v1223_v39 = vsub.f32 %v4081_v61, %v1193_v7  ;;  %v842_v23 = vsub.f32 %v4084_v21, %v825_v18  ;;  %v4236_v61 = vadd.f32 %v1180_v60, %v3924_v34 }
 0x31c   : > { %v4228_v5 = vadd.f32 %v1545_v15, %v3924_v34  ;;  %v1890_v54 = vpop.f32.mrf.mxu1 }
 0x31d   : > { %v1240_v45 = vmul.f32 1.442695, %v1223_v39  ;;  %v872_v44 = vmul.f32 1.442695, %v842_v23  ;;  %v4241_v25 = vpop.eup %3020  ;;  %v4280_v39 = vadd.f32 %v1890_v54, %v3924_v34 }
 0x31e   : > { %1212 = vmax.xlane.f32.xlu0 %v4224_v11 }
 0x31f   : > { %1580 = vmax.xlane.f32.xlu1 %v4228_v5  ;;  %3022 = vpow2.f32 %v1240_v45 }
 0x320   : > { %3024 = vpow2.f32 %v872_v44  ;;  %v4265_v30 = vpop.f32.mrf.mxu0 }
 0x321   : > { %4823 = vst [vmem:[#allocation12_spill] sm:$0xff] %v4265_v30 }
 0x322   : > { %v1195_v21 = vpop.xlane.xlu1 %1194 }
 0x323   : > { %v1547_v20 = vpop.f32.mrf.mxu3  ;;  %v1224_v47 = vsub.f32 %v4092_v24, %v1195_v21 }
 0x324   : > { %v4239_v38 = vadd.f32 %v1547_v20, %v3924_v34  ;;  %v1892_v51 = vpop.f32.mrf.mxu1 }
 0x325   : > { %v4246_v10 = vpop.eup %3022  ;;  %v1242_v60 = vmul.f32 1.442695, %v1224_v47  ;;  %v4283_v18 = vadd.f32 %v1892_v51, %v3924_v34 }
 0x326   : > { %1582 = vmax.xlane.f32.xlu2 %v4239_v38  ;;  %1214 = vmax.xlane.f32.xlu0 %v4236_v61  ;;  %v4250_v33 = vpop.eup %3024  ;;  %v1302_v14 = vpack.c.bf16 %v4246_v10, %v4241_v25 }
 0x327   : > { %1216 = vmax.xlane.f32.xlu1 %v4244_v50  ;;  %v915_v17 = vpack.c.bf16 %v4233_v26, %v4250_v33  ;;  %3026 = vpow2.f32 %v1242_v60 }
 0x328   : > { %1342 = vmatmul.bf16.vlgmr.msrb.gmra.mxu2 %v1302_v14  ;;  %v4277_v19 = vpop.f32.mrf.mxu0 }
 0x329   : > { %1007 = vmatmul.bf16.gmra.mxu0 %v915_v17  ;;  %4824 = vst [vmem:[#allocation13_spill] sm:$0xff] %v4277_v19 }
 0x32a   : > { %v1197_v29 = vpop.xlane.xlu2 %1196 }
 0x32b   : > { %v1550_v58 = vpop.f32.mrf.mxu3  ;;  %v1225_v24 = vsub.f32 %v4099_v9, %v1197_v29 }
 0x32c   : > { %v4270_v28 = vadd.f32 %v1550_v58, %v3924_v34  ;;  %v1895_v48 = vpop.f32.mrf.mxu1 }
 0x32d   : > { %v1244_v35 = vmul.f32 1.442695, %v1225_v24  ;;  %v3027_v41 = vpop.eup %3026 }
 0x32e   : > { %1218 = vmax.xlane.f32.xlu2 %v4259_v46  ;;  %1220 = vmax.xlane.f32.xlu0 %v4262_v16 }
 0x32f   : > { %3028 = vpow2.f32 %v1244_v35 }
 0x330   : > { %v978_v44 = vpop.f32.mrf.mxu0 }
 0x332   : > { %v1199_v27 = vpop.xlane.xlu2 %1198 }
 0x333   : > { %v1552_v31 = vpop.f32.mrf.mxu3  ;;  %v1226_v51 = vsub.f32 %v4106_v49, %v1199_v27 }
 0x334   : > { %v4273_v55 = vadd.f32 %v1552_v31, %v3924_v34  ;;  %v1897_v23 = vpop.f32.mrf.mxu1 }
 0x335   : > { %v3029_v9 = vpop.eup %3028  ;;  %v1246_v35 = vmul.f32 1.442695, %v1226_v51 }
 0x336   : > { %1584 = vmax.xlane.f32.xlu2 %v4270_v28  ;;  %1586 = vmax.xlane.f32.xlu0 %v4273_v55  ;;  %v1303_v4 = vpack.c.bf16 %v3029_v9, %v3027_v41 }
 0x338   : > { %1347 = vmatmul.bf16.gmra.mxu2 %v1303_v4  ;;  %v980_v31 = vpop.f32.mrf.mxu0 }
 0x33a   : > { %v881_v7 = vpop.xlane.xlu2 %880 }
 0x33b   : > { %v1555_v15 = vpop.f32.mrf.mxu3  ;;  %3030 = vrcp.f32 %v881_v7  ;;  %v4299_v7 = vadd.f32 %v1895_v48, %v3924_v34 }
 0x33c   : > { %v4288_v14 = vadd.f32 %v1555_v15, %v3924_v34  ;;  %v1900_v60 = vpop.f32.mrf.mxu1 }
 0x33e   : > { %1932 = vmax.xlane.f32.xlu2 %v4283_v18  ;;  %1930 = vmax.xlane.f32.xlu0 %v4280_v39 }
 0x341   : > { %v3031_v45 = vpop.eup %3030  ;;  %v1561_v20 = vpop.xlane.xlu1 %1560 }
 0x342   : > { %v1031_v21 = vmul.f32 %v3031_v45, %v978_v44  ;;  %v1592_v17 = vsub.f32 %v4117_v37, %v1561_v20  ;;  %v4308_v45 = vadd.f32 %v1897_v23, %v3924_v34  ;;  %v4312_v20 = vpop.f32.mrf.mxu0 }
 0x343   : > { %v1557_v47 = vpop.f32.mrf.mxu3 }
 0x344   : > { %v4291_v54 = vadd.f32 %v1557_v47, %v3924_v34  ;;  %v1608_v29 = vmul.f32 1.442695, %v1592_v17  ;;  %v1047_v17 = vpack.c.bf16 %v1031_v21, %v1031_v21 }
 0x346   : > { %1588 = vmax.xlane.f32.xlu0 %v4288_v14  ;;  %1590 = vmax.xlane.f32.xlu1 %v4291_v54  ;;  %3032 = vpow2.f32 %v1608_v29 }
 0x347   : > { %1274 = vadd.xlane.f32.xlu2 %v3027_v41  ;;  %v1902_v41 = vpop.f32.mrf.mxu1 }
 0x349   : > { %v1563_v58 = vpop.xlane.xlu0 %1562 }
 0x34a   : > { %v1593_v24 = vsub.f32 %v4127_v56, %v1563_v58 }
 0x34c   : > { %v1610_v4 = vmul.f32 1.442695, %v1593_v24  ;;  %v4302_v27 = vpop.eup %3032 }
 0x34e   : > { %3034 = vpow2.f32 %v1610_v4  ;;  %1276 = vadd.xlane.f32.xlu0 %v3029_v9 }
 0x34f   : > { %1934 = vmax.xlane.f32.xlu2 %v4299_v7  ;;  %3036 = vpow2.f32 %v1246_v35 }
 0x351   : > { %v883_v37 = vpop.xlane.xlu0 %882  ;;  %v1565_v49 = vpop.xlane.xlu1 %1564 }
 0x352   : > { %3038 = vrcp.f32 %v883_v37  ;;  %v1594_v56 = vsub.f32 %v4132_v13, %v1565_v49  ;;  %v4318_v37 = vadd.f32 %v1900_v60, %v3924_v34  ;;  %v1905_v49 = vpop.f32.mrf.mxu1 }
 0x354   : > { %v4305_v15 = vpop.eup %3034  ;;  %v1612_v9 = vmul.f32 1.442695, %v1594_v56 }
 0x355   : > { %v1672_v48 = vpack.c.bf16 %v4305_v15, %v4302_v27  ;;  %v3037_v44 = vpop.eup %3036 }
 0x356   : > { %1936 = vmax.xlane.f32.xlu0 %v4308_v45  ;;  %3040 = vpow2.f32 %v1612_v9  ;;  %v4320_v9 = vunpack.c.l.b16 %v1047_v17 }
 0x357   : > { %1278 = vadd.xlane.f32.xlu2 %v3037_v44  ;;  %1712 = vmatmul.bf16.vlgmr.msra.gmra.mxu0 %v1672_v48 }
 0x358   : > { %v3039_v47 = vpop.eup %3038 }
 0x359   : > { %v1032_v13 = vmul.f32 %v3039_v47, %v980_v31  ;;  %v1567_v51 = vpop.xlane.xlu2 %1566  ;;  %v1205_v21 = vpop.xlane.xlu0 %1204 }
 0x35a   : > { %v1595_v29 = vsub.f32 %v4145_v43, %v1567_v51  ;;  %v1201_v23 = vpop.xlane.xlu1 %1200 }
 0x35b   : > { %v1048_v58 = vpack.c.bf16 %v1032_v13, %v1032_v13  ;;  %v1227_v24 = vsub.f32 %v4151_v8, %v1201_v23  ;;  %v985_v8 = vpop.f32.mrf.mxu0  ;;  %v4328_v23 = vpop.f32.mrf.mxu1 }
 0x35c   : > { %v1614_v35 = vmul.f32 1.442695, %v1595_v29  ;;  %v3041_v4 = vpop.eup %3040 }
 0x35d   : > { %v1248_v56 = vmul.f32 1.442695, %v1227_v24  ;;  %v4322_v48 = vunpack.c.l.b16 %v1048_v58  ;;  %1644 = vadd.xlane.f32.xlu1 %v3041_v4  ;;  %v1229_v24 = vsub.f32 %v4148_v0, %v1205_v21 }
 0x35e   : > { %3042 = vpow2.f32 %v1614_v35 }
 0x35f   : > { %1938 = vmax.xlane.f32.xlu2 %v4318_v37  ;;  %3044 = vpow2.f32 %v1248_v56 }
 0x361   : > { %v887_v31 = vpop.xlane.xlu2 %886  ;;  %v891_v35 = vpop.xlane.xlu0 %890 }
 0x362   : > { %v1203_v47 = vpop.xlane.xlu1 %1202  ;;  %3046 = vrcp.f32 %v887_v31 }
 0x363   : > { %v1228_v60 = vsub.f32 %v4158_v63, %v1203_v47  ;;  %v988_v43 = vpop.f32.mrf.mxu0  ;;  %v4336_v21 = vpop.f32.mrf.mxu1 }
 0x364   : > { %v3043_v13 = vpop.eup %3042 }
 0x365   : > { %v1250_v17 = vmul.f32 1.442695, %v1228_v60  ;;  %v1673_v51 = vpack.c.bf16 %v3043_v13, %v3041_v4  ;;  %v3045_v29 = vpop.eup %3044  ;;  %v1252_v4 = vmul.f32 1.442695, %v1229_v24 }
 0x366   : > { %1280 = vadd.xlane.f32.xlu0 %v3045_v29  ;;  %v1304_v58 = vpack.c.bf16 %v3045_v29, %v3037_v44 }
 0x367   : > { %3048 = vpow2.f32 %v1250_v17  ;;  %1646 = vadd.xlane.f32.xlu2 %v3043_v13  ;;  %1717 = vmatmul.bf16.gmra.mxu0 %v1673_v51  ;;  %v4333_v17 = vadd.f32 %v1902_v41, %v3924_v34 }
 0x368   : > { %1352 = vmatmul.bf16.gmra.mxu2 %v1304_v58  ;;  %v3047_v31 = vpop.eup %3046 }
 0x369   : > { %v1571_v56 = vpop.xlane.xlu2 %1570  ;;  %v1034_v44 = vmul.f32 %v3047_v31, %v985_v8 }
 0x36a   : > { %v1597_v63 = vsub.f32 %v4171_v3, %v1571_v56  ;;  %v885_v47 = vpop.xlane.xlu1 %884  ;;  %v4341_v56 = vadd.f32 %v1905_v49, %v3924_v34 }
 0x36b   : > { %3050 = vrcp.f32 %v885_v47  ;;  %v1050_v51 = vpack.c.bf16 %v1034_v44, %v1034_v44 }
 0x36c   : > { %3052 = vrcp.f32 %v891_v35  ;;  %v1618_v60 = vmul.f32 1.442695, %v1597_v63  ;;  %v990_v35 = vpop.f32.mrf.mxu0 }
 0x36d   : > { %v3049_v30 = vpop.eup %3048 }
 0x36e   : > { %3054 = vpow2.f32 %v1618_v60  ;;  %1940 = vmax.xlane.f32.xlu0 %v4333_v17  ;;  %v4345_v60 = vunpack.c.l.b16 %v1050_v51 }
 0x36f   : > { %1282 = vadd.xlane.f32.xlu2 %v3049_v30  ;;  %3056 = vpow2.f32 %v1252_v4 }
 0x371   : > { %v3051_v0 = vpop.eup %3050  ;;  %v889_v3 = vpop.xlane.xlu2 %888 }
 0x372   : > { %v3053_v13 = vpop.eup %3052  ;;  %v1033_v29 = vmul.f32 %v3051_v0, %v4312_v20  ;;  %3058 = vrcp.f32 %v889_v3  ;;  %v1569_v58 = vpop.xlane.xlu1 %1568 }
 0x373   : > { %v1596_v24 = vsub.f32 %v4177_v22, %v1569_v58  ;;  %v1036_v63 = vmul.f32 %v3053_v13, %v990_v35 }
 0x374   : > { %v3055_v41 = vpop.eup %3054  ;;  %v1049_v8 = vpack.c.bf16 %v1033_v29, %v1033_v29 }
 0x375   : > { %v1616_v47 = vmul.f32 1.442695, %v1596_v24  ;;  %v3057_v31 = vpop.eup %3056  ;;  %v1052_v0 = vpack.c.bf16 %v1036_v63, %v1036_v63  ;;  %v1912_v24 = vpop.f32.mrf.mxu1 }
 0x376   : > { %v4343_v4 = vunpack.c.l.b16 %v1049_v8  ;;  %1942 = vmax.xlane.f32.xlu0 %v4341_v56  ;;  %v1305_v20 = vpack.c.bf16 %v3057_v31, %v3049_v30 }
 0x377   : > { %3060 = vpow2.f32 %v1616_v47  ;;  %1650 = vadd.xlane.f32.xlu2 %v3055_v41  ;;  %v4355_v19 = vunpack.c.l.b16 %v1052_v0 }
 0x378   : > { %v3059_v44 = vpop.eup %3058  ;;  %1357 = vmatmul.bf16.gmra.mxu2 %v1305_v20  ;;  %v993_v20 = vpop.f32.mrf.mxu0 }
 0x379   : > { %v1035_v3 = vmul.f32 %v3059_v44, %v988_v43  ;;  %v1573_v49 = vpop.xlane.xlu2 %1572  ;;  %v1575_v29 = vpop.xlane.xlu0 %1574 }
 0x37a   : > { %v1598_v13 = vsub.f32 %v4190_v36, %v1573_v49  ;;  %v1207_v58 = vpop.xlane.xlu1 %1206  ;;  %v1599_v35 = vsub.f32 %v4193_v62, %v1575_v29 }
 0x37b   : > { %v1051_v51 = vpack.c.bf16 %v1035_v3, %v1035_v3  ;;  %v1230_v47 = vsub.f32 %v4196_v52, %v1207_v58 }
 0x37c   : > { %v1620_v22 = vmul.f32 1.442695, %v1598_v13  ;;  %v1622_v63 = vmul.f32 1.442695, %v1599_v35 }
 0x37d   : > { %v3061_v8 = vpop.eup %3060  ;;  %v4353_v30 = vunpack.c.l.b16 %v1051_v51  ;;  %v1254_v44 = vmul.f32 1.442695, %v1230_v47  ;;  %v4365_v13 = vpop.f32.mrf.mxu1 }
 0x37e   : > { %1648 = vadd.xlane.f32.xlu1 %v3061_v8  ;;  %v1674_v43 = vpack.c.bf16 %v3055_v41, %v3061_v8  ;;  %1284 = vadd.xlane.f32.xlu0 %v3057_v31  ;;  %3062 = vpow2.f32 %v1620_v22  ;;  %v4363_v41 = vadd.f32 %v4328_v23, %v3924_v34 }
 0x37f   : > { %3064 = vpow2.f32 %v1622_v63 }
 0x380   : > { %1722 = vmatmul.bf16.gmra.mxu0 %v1674_v43  ;;  %v995_v43 = vpop.f32.mrf.mxu0 }
 0x381   : > { %v1209_v3 = vpop.xlane.xlu2 %1208  ;;  %v1211_v52 = vpop.xlane.xlu0 %1210 }
 0x382   : > { %v1231_v62 = vsub.f32 %v4202_v42, %v1209_v3  ;;  %v895_v49 = vpop.xlane.xlu1 %894  ;;  %v1232_v0 = vsub.f32 %v4205_v40, %v1211_v52 }
 0x383   : > { %3066 = vrcp.f32 %v895_v49 }
 0x384   : > { %v1256_v31 = vmul.f32 1.442695, %v1231_v62  ;;  %3068 = vpow2.f32 %v1254_v44  ;;  %v1258_v29 = vmul.f32 1.442695, %v1232_v0  ;;  %v3063_v42 = vpop.eup %3062 }
 0x385   : > { %v3065_v22 = vpop.eup %3064  ;;  %v1917_v0 = vpop.f32.mrf.mxu1 }
 0x386   : > { %3070 = vpow2.f32 %v1256_v31  ;;  %1944 = vmax.xlane.f32.xlu1 %v4363_v41  ;;  %v1675_v49 = vpack.c.bf16 %v3065_v22, %v3063_v42 }
 0x387   : > { %3072 = vpow2.f32 %v1258_v29 }
 0x389   : > { %v893_v58 = vpop.xlane.xlu2 %892  ;;  %v3067_v51 = vpop.eup %3066 }
 0x38a   : > { %3074 = vrcp.f32 %v893_v58  ;;  %v1577_v40 = vpop.xlane.xlu0 %1576  ;;  %v1579_v35 = vpop.xlane.xlu1 %1578  ;;  %v1038_v3 = vmul.f32 %v3067_v51, %v995_v43  ;;  %v4371_v51 = vadd.f32 %v1912_v24, %v3924_v34 }
 0x38b   : > { %v3069_v8 = vpop.eup %3068  ;;  %v1600_v23 = vsub.f32 %v4213_v53, %v1577_v40  ;;  %v1601_v62 = vsub.f32 %v4216_v6, %v1579_v35  ;;  %v4376_v35 = vadd.f32 %v4336_v21, %v3924_v34 }
 0x38c   : > { %v3071_v47 = vpop.eup %3070  ;;  %v1054_v29 = vpack.c.bf16 %v1038_v3, %v1038_v3 }
 0x38d   : > { %v3073_v63 = vpop.eup %3072  ;;  %v1624_v44 = vmul.f32 1.442695, %v1600_v23  ;;  %1288 = vadd.xlane.f32.xlu2 %v3071_v47  ;;  %v1306_v52 = vpack.c.bf16 %v3071_v47, %v3069_v8  ;;  %v1626_v53 = vmul.f32 1.442695, %v1601_v62  ;;  %v1920_v24 = vpop.f32.mrf.mxu1 }
 0x38e   : > { %1290 = vadd.xlane.f32.xlu0 %v3073_v63  ;;  %1286 = vadd.xlane.f32.xlu1 %v3069_v8 }
 0x38f   : > { %3076 = vpow2.f32 %v1624_v44  ;;  %1362 = vmatmul.bf16.gmra.mxu2 %v1306_v52 }
 0x390   : > { %v3075_v31 = vpop.eup %3074  ;;  %1727 = vmatmul.bf16.gmra.mxu0 %v1675_v49  ;;  %3078 = vpow2.f32 %v1626_v53  ;;  %v4388_v49 = vadd.f32 %v1917_v0, %v3924_v34 }
 0x391   : > { %v1037_v58 = vmul.f32 %v3075_v31, %v993_v20  ;;  %v4381_v20 = vunpack.c.l.b16 %v1054_v29 }
 0x392   : > { %v1213_v40 = vpop.xlane.xlu0 %1212  ;;  %v1581_v36 = vpop.xlane.xlu1 %1580 }
 0x393   : > { %v1053_v23 = vpack.c.bf16 %v1037_v58, %v1037_v58  ;;  %v1233_v6 = vsub.f32 %v4224_v11, %v1213_v40 }
 0x395   : > { %v3077_v8 = vpop.eup %3076  ;;  %v1260_v47 = vmul.f32 1.442695, %v1233_v6  ;;  %1948 = vmax.xlane.f32.xlu2 %v4371_v51  ;;  %v4379_v43 = vunpack.c.l.b16 %v1053_v23  ;;  %v4393_v23 = vpop.f32.mrf.mxu0  ;;  %v1602_v6 = vsub.f32 %v4228_v5, %v1581_v36 }
 0x396   : > { %1656 = vadd.xlane.f32.xlu0 %v3077_v8  ;;  %1946 = vmax.xlane.f32.xlu1 %v4376_v35  ;;  %v3079_v62 = vpop.eup %3078 }
 0x397   : > { %3080 = vpow2.f32 %v1260_v47  ;;  %v1676_v40 = vpack.c.bf16 %v3079_v62, %v3077_v8 }
 0x399   : > { %v1583_v3 = vpop.xlane.xlu2 %1582 }
 0x39a   : > { %v1215_v21 = vpop.xlane.xlu0 %1214  ;;  %v1217_v44 = vpop.xlane.xlu1 %1216  ;;  %v1603_v52 = vsub.f32 %v4239_v38, %v1583_v3 }
 0x39b   : > { %v1234_v31 = vsub.f32 %v4236_v61, %v1215_v21  ;;  %v1235_v58 = vsub.f32 %v4244_v50, %v1217_v44  ;;  %v4398_v50 = vadd.f32 %v4365_v13, %v3924_v34 }
 0x39c   : > { %v1630_v47 = vmul.f32 1.442695, %v1603_v52 }
 0x39d   : > { %v3081_v29 = vpop.eup %3080  ;;  %1654 = vadd.xlane.f32.xlu2 %v3065_v22  ;;  %v1262_v38 = vmul.f32 1.442695, %v1234_v31  ;;  %v1264_v0 = vmul.f32 1.442695, %v1235_v58  ;;  %v1628_v22 = vmul.f32 1.442695, %v1602_v6  ;;  %v4406_v8 = vpop.f32.mrf.mxu0 }
 0x39e   : > { %1952 = vmax.xlane.f32.xlu0 %v4388_v49  ;;  %1652 = vadd.xlane.f32.xlu1 %v3063_v42  ;;  %v1307_v53 = vpack.c.bf16 %v3081_v29, %v3073_v63  ;;  %3082 = vpow2.f32 %v1630_v47  ;;  %v4401_v42 = vadd.f32 %v1920_v24, %v3924_v34  ;;  %v1922_v63 = vpop.f32.mrf.mxu1 }
 0x39f   : > { %3084 = vpow2.f32 %v1262_v38 }
 0x3a0   : > { %1367 = vmatmul.bf16.gmra.mxu2 %v1307_v53  ;;  %1732 = vmatmul.bf16.gmra.mxu0 %v1676_v40  ;;  %3086 = vpow2.f32 %v1264_v0 }
 0x3a1   : > { %v1219_v3 = vpop.xlane.xlu2 %1218  ;;  %3088 = vpow2.f32 %v1628_v22 }
 0x3a2   : > { %v1221_v61 = vpop.xlane.xlu0 %1220  ;;  %v1236_v5 = vsub.f32 %v4259_v46, %v1219_v3 }
 0x3a3   : > { %v1237_v31 = vsub.f32 %v4262_v16, %v1221_v61 }
 0x3a4   : > { %v3083_v36 = vpop.eup %3082  ;;  %v1266_v24 = vmul.f32 1.442695, %v1236_v5 }
 0x3a5   : > { %1950 = vmax.xlane.f32.xlu2 %v4398_v50  ;;  %v3085_v21 = vpop.eup %3084  ;;  %v1268_v47 = vmul.f32 1.442695, %v1237_v31  ;;  %v4411_v16 = vpop.f32.mrf.mxu0 }
 0x3a6   : > { %1954 = vmax.xlane.f32.xlu0 %v4401_v42  ;;  %1292 = vadd.xlane.f32.xlu1 %v3081_v29  ;;  %v3087_v52 = vpop.eup %3086  ;;  %v1925_v29 = vpop.f32.mrf.mxu1  ;;  %3090 = vpow2.f32 %v1266_v24  ;;  %4825 = vst [vmem:[#allocation14_spill] sm:$0xff] %v4411_v16 }
 0x3a7   : > { %v3089_v53 = vpop.eup %3088  ;;  %v1308_v46 = vpack.c.bf16 %v3087_v52, %v3085_v21  ;;  %3092 = vpow2.f32 %v1268_v47 }
 0x3a8   : > { %v1677_v6 = vpack.c.bf16 %v3083_v36, %v3089_v53 }
 0x3a9   : > { %v1585_v13 = vpop.xlane.xlu2 %1584 }
 0x3aa   : > { %v1587_v44 = vpop.xlane.xlu0 %1586  ;;  %v1604_v58 = vsub.f32 %v4270_v28, %v1585_v13 }
 0x3ab   : > { %v1605_v40 = vsub.f32 %v4273_v55, %v1587_v44 }
 0x3ac   : > { %v1632_v38 = vmul.f32 1.442695, %v1604_v58  ;;  %v3091_v28 = vpop.eup %3090  ;;  %v4421_v58 = vadd.f32 %v1922_v63, %v3924_v34 }
 0x3ad   : > { %1294 = vadd.xlane.f32.xlu2 %v3085_v21  ;;  %v1634_v0 = vmul.f32 1.442695, %v1605_v40 }
 0x3ae   : > { %1662 = vadd.xlane.f32.xlu0 %v3083_v36  ;;  %1658 = vadd.xlane.f32.xlu1 %v3079_v62  ;;  %3094 = vpow2.f32 %v1632_v38  ;;  %v1927_v55 = vpop.f32.mrf.mxu1  ;;  %v3093_v62 = vpop.eup %3092 }
 0x3af   : > { %3096 = vpow2.f32 %v1634_v0  ;;  %v4417_v24 = vadd.f32 %v1927_v55, %v3924_v34  ;;  %v4430_v0 = vadd.f32 %v1925_v29, %v3924_v34 }
 0x3b0   : > { %1372 = vmatmul.bf16.gmra.mxu2 %v1308_v46  ;;  %1737 = vmatmul.bf16.gmra.mxu0 %v1677_v6  ;;  %v1309_v46 = vpack.c.bf16 %v3093_v62, %v3091_v28 }
 0x3b1   : > { %v1933_v3 = vpop.xlane.xlu2 %1932 }
 0x3b2   : > { %v1931_v22 = vpop.xlane.xlu0 %1930  ;;  %v1963_v36 = vsub.f32 %v4283_v18, %v1933_v3  ;;  %v4434_v3 = vpop.f32.mrf.mxu2 }
 0x3b3   : > { %v1962_v31 = vsub.f32 %v4280_v39, %v1931_v22 }
 0x3b4   : > { %v3095_v5 = vpop.eup %3094  ;;  %v1980_v18 = vmul.f32 1.442695, %v1963_v36 }
 0x3b5   : > { %1660 = vadd.xlane.f32.xlu2 %v3089_v53  ;;  %v3097_v44 = vpop.eup %3096  ;;  %v4424_v53 = vpop.f32.mrf.mxu0  ;;  %v1978_v47 = vmul.f32 1.442695, %v1962_v31 }
 0x3b6   : > { %1298 = vadd.xlane.f32.xlu0 %v3091_v28  ;;  %1296 = vadd.xlane.f32.xlu1 %v3087_v52  ;;  %4826 = vst [vmem:[#allocation15_spill] sm:$0xff] %v4424_v53  ;;  %v1678_v6 = vpack.c.bf16 %v3097_v44, %v3095_v5  ;;  %3098 = vpow2.f32 %v1980_v18 }
 0x3b7   : > { %3100 = vpow2.f32 %v1978_v47 }
 0x3b9   : > { %v1591_v61 = vpop.xlane.xlu1 %1590 }
 0x3ba   : > { %v1589_v13 = vpop.xlane.xlu0 %1588  ;;  %v4414_v21 = vpop.xlane.xlu2 %1274  ;;  %v1607_v52 = vsub.f32 %v4291_v54, %v1591_v61 }
 0x3bb   : > { %v1606_v40 = vsub.f32 %v4288_v14, %v1589_v13  ;;  %v4451_v31 = vpop.f32.mrf.mxu2 }
 0x3bc   : > { %v1638_v38 = vmul.f32 1.442695, %v1607_v52  ;;  %v4439_v28 = vpop.eup %3098 }
 0x3bd   : > { %1960 = vmax.xlane.f32.xlu2 %v4417_v24  ;;  %v1636_v39 = vmul.f32 1.442695, %v1606_v40  ;;  %v4432_v14 = vpop.f32.mrf.mxu0  ;;  %v4441_v55 = vpop.eup %3100 }
 0x3be   : > { %1664 = vadd.xlane.f32.xlu0 %v3095_v5  ;;  %1956 = vmax.xlane.f32.xlu1 %v4421_v58  ;;  %3102 = vpow2.f32 %v1638_v38  ;;  %4827 = vst [vmem:[#allocation16_spill] sm:$0xff] %v4432_v14 }
 0x3bf   : > { %3104 = vpow2.f32 %v1636_v39 }
 0x3c0   : > { %1377 = vmatmul.bf16.gmra.mxu2 %v1309_v46  ;;  %1742 = vmatmul.bf16.gmra.mxu0 %v1678_v6 }
 0x3c2   : > { %v1277_v63 = vpop.xlane.xlu0 %1276  ;;  %v1935_v54 = vpop.xlane.xlu2 %1934 }
 0x3c3   : > { %v1964_v22 = vsub.f32 %v4299_v7, %v1935_v54  ;;  %v1348_v46 = vpop.f32.mrf.mxu2 }
 0x3c4   : > { %v3103_v61 = vpop.eup %3102 }
 0x3c5   : > { %1666 = vadd.xlane.f32.xlu2 %v3097_v44  ;;  %v3105_v5 = vpop.eup %3104  ;;  %v1982_v36 = vmul.f32 1.442695, %v1964_v22  ;;  %v4449_v44 = vpop.f32.mrf.mxu0 }
 0x3c6   : > { %896 = vadd.xlane.f32.xlu0 %v4161_v32  ;;  %1958 = vmax.xlane.f32.xlu1 %v4430_v0  ;;  %v2042_v32 = vpack.c.bf16 %v4439_v28, %v4441_v55  ;;  %v1679_v7 = vpack.c.bf16 %v3103_v61, %v3105_v5  ;;  %4828 = vst [vmem:[#allocation19_spill] sm:$0xff] %v4449_v44 }
 0x3c7   : > { %3106 = vpow2.f32 %v1982_v36 }
 0x3ca   : > { %v1937_v34 = vpop.xlane.xlu0 %1936  ;;  %v4443_v29 = vpop.xlane.xlu2 %1278 }
 0x3cb   : > { %v1965_v13 = vsub.f32 %v4308_v45, %v1937_v34 }
 0x3cd   : > { %1300 = vadd.xlane.f32.xlu2 %v3093_v62  ;;  %v1984_v52 = vmul.f32 1.442695, %v1965_v13  ;;  %v3107_v45 = vpop.eup %3106 }
 0x3ce   : > { %1270 = vadd.xlane.f32.xlu1 %v4241_v25  ;;  %1670 = vadd.xlane.f32.xlu0 %v3103_v61  ;;  %v1350_v61 = vpop.f32.mrf.mxu2 }
 0x3cf   : > { %3108 = vpow2.f32 %v1984_v52 }
 0x3d0   : > { %1747 = vmatmul.bf16.gmra.mxu0 %v1679_v7  ;;  %2082 = vmatmul.bf16.vlgmr.msra.gmra.mxu2 %v2042_v32  ;;  %v1645_v32 = vpop.xlane.xlu1 %1644 }
 0x3d2   : > { %v1939_v40 = vpop.xlane.xlu2 %1938 }
 0x3d3   : > { %v1966_v18 = vsub.f32 %v4318_v37, %v1939_v40 }
 0x3d4   : > { %v4455_v25 = vpop.f32.mrf.mxu0 }
 0x3d5   : > { %v1986_v62 = vmul.f32 1.442695, %v1966_v18  ;;  %1272 = vadd.xlane.f32.xlu2 %v4246_v10  ;;  %v3109_v47 = vpop.eup %3108 }
 0x3d6   : > { %1668 = vadd.xlane.f32.xlu1 %v3105_v5  ;;  %2014 = vadd.xlane.f32.xlu0 %v3107_v45  ;;  %v2043_v37 = vpack.c.bf16 %v3109_v47, %v3107_v45 }
 0x3d7   : > { %3110 = vpow2.f32 %v1986_v62 }
 0x3d8   : > { %3112 = vrcp.f32 %v1277_v63 }
 0x3d9   : > { %v4457_v6 = vpop.xlane.xlu0 %1280  ;;  %3114 = vrcp.f32 %v4414_v21 }
 0x3da   : > { %v1647_v36 = vpop.xlane.xlu2 %1646 }
 0x3dc   : > { %v4461_v39 = vpop.f32.mrf.mxu0 }
 0x3dd   : > { %v3111_v38 = vpop.eup %3110  ;;  %1640 = vadd.xlane.f32.xlu2 %v4302_v27 }
 0x3de   : > { %2016 = vadd.xlane.f32.xlu1 %v3109_v47  ;;  %2018 = vadd.xlane.f32.xlu0 %v3111_v38  ;;  %v3113_v10 = vpop.eup %3112 }
 0x3df   : > { %v3115_v22 = vpop.eup %3114  ;;  %v1402_v5 = vmul.f32 %v3113_v10, %v1350_v61 }
 0x3e0   : > { %2087 = vmatmul.bf16.gmra.mxu2 %v2043_v37  ;;  %v1401_v13 = vmul.f32 %v3115_v22, %v1348_v46 }
 0x3e1   : > { %v1941_v54 = vpop.xlane.xlu0 %1940  ;;  %v1418_v21 = vpack.c.bf16 %v1402_v5, %v1402_v5 }
 0x3e2   : > { %v1967_v34 = vsub.f32 %v4333_v17, %v1941_v54  ;;  %v1417_v27 = vpack.c.bf16 %v1401_v13, %v1401_v13  ;;  %v4466_v62 = vpop.xlane.xlu2 %1282 }
 0x3e3   : > { %v2230_v52 = vunpack.c.l.b16 %v1418_v21 }
 0x3e4   : > { %v1988_v63 = vmul.f32 1.442695, %v1967_v34  ;;  %v1718_v7 = vpop.f32.mrf.mxu0  ;;  %v2229_v45 = vunpack.c.l.b16 %v1417_v27 }
 0x3e6   : > { %3116 = vpow2.f32 %v1988_v63  ;;  %v2244_v17 = vpack.c.b16 %v2230_v52, %v2229_v45 }
 0x3e9   : > { %v1943_v37 = vpop.xlane.xlu0 %1942 }
 0x3ea   : > { %v1968_v46 = vsub.f32 %v4341_v56, %v1943_v37  ;;  %v1651_v61 = vpop.xlane.xlu2 %1650 }
 0x3eb   : > { %v4464_v40 = vpop.f32.mrf.mxu2 }
 0x3ec   : > { %v3117_v18 = vpop.eup %3116  ;;  %v1720_v54 = vpop.f32.mrf.mxu0  ;;  %v1990_v34 = vmul.f32 1.442695, %v1968_v46 }
 0x3ed   : > { %2020 = vadd.xlane.f32.xlu1 %v3117_v18  ;;  %v2044_v47 = vpack.c.bf16 %v3117_v18, %v3111_v38 }
 0x3ee   : > { %3118 = vpow2.f32 %v1990_v34 }
 0x3f0   : > { %2092 = vmatmul.bf16.gmra.mxu2 %v2044_v47 }
 0x3f1   : > { %v4468_v10 = vpop.xlane.xlu1 %1648  ;;  %v4472_v5 = vpop.xlane.xlu0 %1284 }
 0x3f2   : > { %2253 = vrot.lane.b32.xlu0 %v2244_v17, %s3418_s6 }
 0x3f3   : > { %v1355_v22 = vpop.f32.mrf.mxu2 }
 0x3f4   : > { %v4479_v56 = vpop.eup %3118 }
 0x3f9   : > { %v1945_v63 = vpop.xlane.xlu1 %1944 }
 0x3fa   : > { %v1969_v13 = vsub.f32 %v4363_v41, %v1945_v63 }
 0x3fb   : > { %v4477_v27 = vpop.f32.mrf.mxu2 }
 0x3fc   : > { %v1992_v21 = vmul.f32 1.442695, %v1969_v13 }
 0x3fd   : > { %v4475_v38 = vpop.f32.mrf.mxu0 }
 0x3fe   : > { %3120 = vpow2.f32 %v1992_v21 }
 0x3ff   : > { %3122 = vrcp.f32 %v1647_v36 }
 0x400   : > { %v1289_v52 = vpop.xlane.xlu2 %1288  ;;  %3124 = vrcp.f32 %v1645_v32 }
 0x401   : > { %v1291_v18 = vpop.xlane.xlu0 %1290  ;;  %v1287_v45 = vpop.xlane.xlu1 %1286 }
 0x402   : > { %3126 = vrcp.f32 %v1287_v45 }
 0x403   : > { %v4487_v13 = vpop.f32.mrf.mxu2 }
 0x404   : > { %v3121_v47 = vpop.eup %3120 }
 0x405   : > { %v4481_v37 = vpop.f32.mrf.mxu0  ;;  %2024 = vadd.xlane.f32.xlu1 %v3121_v47  ;;  %v2045_v17 = vpack.c.bf16 %v3121_v47, %v4479_v56  ;;  %v3123_v47 = vpop.eup %3122 }
 0x406   : > { %v3125_v16 = vpop.eup %3124 }
 0x407   : > { %2097 = vmatmul.bf16.gmra.mxu2 %v2045_v17  ;;  %v1772_v17 = vmul.f32 %v3123_v47, %v1720_v54  ;;  %v1771_v2 = vmul.f32 %v3125_v16, %v1718_v7 }
 0x408   : > { %v1949_v41 = vpop.xlane.xlu2 %1948  ;;  %v3127_v53 = vpop.eup %3126 }
 0x409   : > { %v4484_v46 = vpop.xlane.xlu0 %1656  ;;  %v1971_v34 = vsub.f32 %v4371_v51, %v1949_v41  ;;  %v1947_v63 = vpop.xlane.xlu1 %1946  ;;  %v1788_v45 = vpack.c.bf16 %v1772_v17, %v1772_v17 }
 0x40a   : > { %v1970_v21 = vsub.f32 %v4376_v35, %v1947_v63 }
 0x40b   : > { %v1996_v11 = vmul.f32 1.442695, %v1971_v34  ;;  %v1787_v34 = vpack.c.bf16 %v1771_v2, %v1771_v2  ;;  %v2286_v16 = vunpack.c.l.b16 %v1788_v45 }
 0x40c   : > { %v1994_v14 = vmul.f32 1.442695, %v1970_v21 }
 0x40d   : > { %3128 = vpow2.f32 %v1996_v11  ;;  %v4490_v44 = vpop.f32.mrf.mxu0  ;;  %v2285_v17 = vunpack.c.l.b16 %v1787_v34 }
 0x40e   : > { %3130 = vpow2.f32 %v1994_v14 }
 0x40f   : > { %3132 = vrcp.f32 %v4457_v6  ;;  %v2300_v45 = vpack.c.b16 %v2286_v16, %v2285_v17 }
 0x410   : > { %v1655_v36 = vpop.xlane.xlu2 %1654  ;;  %3134 = vrcp.f32 %v4443_v29 }
 0x411   : > { %v1953_v51 = vpop.xlane.xlu0 %1952  ;;  %v1653_v41 = vpop.xlane.xlu1 %1652  ;;  %3136 = vrcp.f32 %v1289_v52 }
 0x412   : > { %v1363_v57 = vpop.f32.mrf.mxu2  ;;  %v1973_v14 = vsub.f32 %v4388_v49, %v1953_v51  ;;  %3138 = vrcp.f32 %v1651_v61 }
 0x413   : > { %v4493_v35 = vpop.eup %3128  ;;  %v1407_v32 = vmul.f32 %v3127_v53, %v1363_v57  ;;  %3140 = vrcp.f32 %v4468_v10 }
 0x414   : > { %v3131_v11 = vpop.eup %3130  ;;  %v2000_v21 = vmul.f32 1.442695, %v1973_v14  ;;  %3142 = vrcp.f32 %v1291_v18 }
 0x415   : > { %v4497_v54 = vpop.f32.mrf.mxu0  ;;  %2026 = vadd.xlane.f32.xlu2 %v3131_v11  ;;  %v2046_v6 = vpack.c.bf16 %v4493_v35, %v3131_v11  ;;  %v3133_v63 = vpop.eup %3132  ;;  %3144 = vrcp.f32 %v1655_v36  ;;  %v1423_v61 = vpack.c.bf16 %v1407_v32, %v1407_v32 }
 0x416   : > { %v1404_v7 = vmul.f32 %v3133_v63, %v1355_v22  ;;  %v3135_v29 = vpop.eup %3134  ;;  %3146 = vpow2.f32 %v2000_v21 }
 0x417   : > { %2102 = vmatmul.bf16.gmra.mxu2 %v2046_v6  ;;  %v3137_v52 = vpop.eup %3136  ;;  %v1403_v51 = vmul.f32 %v3135_v29, %v4464_v40  ;;  %v4509_v36 = vunpack.c.l.b16 %v1423_v61 }
 0x418   : > { %v1951_v47 = vpop.xlane.xlu2 %1950  ;;  %v1420_v14 = vpack.c.bf16 %v1404_v7, %v1404_v7 }
 0x419   : > { %v4501_v57 = vpop.xlane.xlu0 %1954  ;;  %v1972_v49 = vsub.f32 %v4398_v50, %v1951_v47  ;;  %v1293_v53 = vpop.xlane.xlu1 %1292  ;;  %v1419_v63 = vpack.c.bf16 %v1403_v51, %v1403_v51 }
 0x41a   : > { %v1365_v2 = vpop.f32.mrf.mxu2  ;;  %v3139_v50 = vpop.eup %3138  ;;  %v2232_v16 = vunpack.c.l.b16 %v1420_v14 }
 0x41b   : > { %v1998_v11 = vmul.f32 1.442695, %v1972_v49  ;;  %v1408_v22 = vmul.f32 %v3137_v52, %v1365_v2  ;;  %v3141_v40 = vpop.eup %3140  ;;  %v1774_v18 = vmul.f32 %v3139_v50, %v4481_v37  ;;  %v2231_v37 = vunpack.c.l.b16 %v1419_v63 }
 0x41c   : > { %2022 = vadd.xlane.f32.xlu0 %v4479_v56  ;;  %v3143_v34 = vpop.eup %3142  ;;  %v1773_v21 = vmul.f32 %v3141_v40, %v4475_v38 }
 0x41d   : > { %3148 = vpow2.f32 %v1998_v11  ;;  %v1424_v10 = vpack.c.bf16 %v1408_v22, %v1408_v22  ;;  %v1733_v6 = vpop.f32.mrf.mxu0  ;;  %v3145_v7 = vpop.eup %3144  ;;  %v1790_v52 = vpack.c.bf16 %v1774_v18, %v1774_v18  ;;  %v2245_v2 = vpack.c.b16 %v2232_v16, %v2231_v37 }
 0x41e   : > { %3150 = vrcp.f32 %v1653_v41  ;;  %2309 = vrot.lane.b32.xlu1 %v2300_v45, %s3416_s21  ;;  %v4518_v49 = vpop.eup %3146  ;;  %v1789_v22 = vpack.c.bf16 %v1773_v21, %v1773_v21  ;;  %v1776_v63 = vmul.f32 %v3145_v7, %v4497_v54  ;;  %v1974_v54 = vsub.f32 %v4401_v42, %v4501_v57 }
 0x41f   : > { %3152 = vrcp.f32 %v4484_v46  ;;  %v4511_v32 = vunpack.c.l.b16 %v1424_v10  ;;  %v2288_v10 = vunpack.c.l.b16 %v1790_v52 }
 0x420   : > { %v1295_v56 = vpop.xlane.xlu2 %1294  ;;  %v1792_v52 = vpack.c.bf16 %v1776_v63, %v1776_v63 }
 0x421   : > { %v2247_v41 = vpack.c.b16 %v4511_v32, %v4509_v36  ;;  %v4516_v47 = vpop.xlane.xlu0 %1662  ;;  %v1659_v29 = vpop.xlane.xlu1 %1658 }
 0x422   : > { %3154 = vrcp.f32 %v1659_v29 }
 0x423   : > { %v4520_v46 = vpop.eup %3148  ;;  %v1368_v17 = vpop.f32.mrf.mxu2  ;;  %3156 = vrcp.f32 %v1293_v53 }
 0x424   : > { %v3151_v51 = vpop.eup %3150  ;;  %v1409_v61 = vmul.f32 %v3143_v34, %v1368_v17  ;;  %1642 = vadd.xlane.f32.xlu0 %v4305_v15  ;;  %v2047_v38 = vpack.c.bf16 %v4518_v49, %v4520_v46  ;;  %v2287_v15 = vunpack.c.l.b16 %v1789_v22  ;;  %3158 = vrcp.f32 %v4466_v62 }
 0x425   : > { %v3153_v11 = vpop.eup %3152  ;;  %v1735_v45 = vpop.f32.mrf.mxu0  ;;  %v1775_v50 = vmul.f32 %v3151_v51, %v4490_v44  ;;  %3160 = vrcp.f32 %v4472_v5  ;;  %v2290_v22 = vunpack.c.l.b16 %v1792_v52 }
 0x426   : > { %v1777_v14 = vmul.f32 %v3153_v11, %v1733_v6  ;;  %2255 = vrot.lane.b32.xlu1 %v2245_v2, %s3418_s6  ;;  %v2301_v6 = vpack.c.b16 %v2288_v10, %v2287_v15  ;;  %v1425_v7 = vpack.c.bf16 %v1409_v61, %v1409_v61  ;;  %3162 = vrcp.f32 %v1295_v56 }
 0x427   : > { %2107 = vmatmul.bf16.gmra.mxu2 %v2047_v38  ;;  %v1791_v37 = vpack.c.bf16 %v1775_v50, %v1775_v50 }
 0x428   : > { %v4528_v40 = vpop.xlane.xlu2 %1660  ;;  %v3155_v18 = vpop.eup %3154  ;;  %v1793_v16 = vpack.c.bf16 %v1777_v14, %v1777_v14  ;;  %v2002_v14 = vmul.f32 1.442695, %v1974_v54  ;;  %v4542_v42 = vunpack.c.l.b16 %v1425_v7 }
 0x429   : > { %v1297_v34 = vpop.xlane.xlu1 %1296  ;;  %v1778_v21 = vmul.f32 %v3155_v18, %v1735_v45  ;;  %v1299_v53 = vpop.xlane.xlu0 %1298  ;;  %v2289_v11 = vunpack.c.l.b16 %v1791_v37 }
 0x42a   : > { %v3157_v29 = vpop.eup %3156  ;;  %v4538_v2 = vunpack.c.l.b16 %v1793_v16  ;;  %3164 = vpow2.f32 %v2002_v14 }
 0x42b   : > { %v1370_v44 = vpop.f32.mrf.mxu2  ;;  %v1794_v17 = vpack.c.bf16 %v1778_v21, %v1778_v21  ;;  %v3159_v45 = vpop.eup %3158  ;;  %v2302_v16 = vpack.c.b16 %v2290_v22, %v2289_v11  ;;  %3166 = vrcp.f32 %v1297_v34 }
 0x42c   : > { %v1410_v51 = vmul.f32 %v3157_v29, %v1370_v44  ;;  %2028 = vadd.xlane.f32.xlu0 %v4493_v35  ;;  %v3161_v61 = vpop.eup %3160  ;;  %v1405_v29 = vmul.f32 %v3159_v45, %v4477_v27 }
 0x42d   : > { %v4535_v62 = vpop.f32.mrf.mxu0  ;;  %2311 = vrot.lane.b32.xlu2 %v2301_v6, %s3416_s21  ;;  %v4540_v5 = vunpack.c.l.b16 %v1794_v17  ;;  %v1406_v50 = vmul.f32 %v3161_v61, %v4487_v13  ;;  %v3163_v15 = vpop.eup %3162 }
 0x42e   : > { %v1426_v38 = vpack.c.bf16 %v1410_v51, %v1410_v51  ;;  %v1421_v54 = vpack.c.bf16 %v1405_v29, %v1405_v29 }
 0x42f   : > { %v2303_v57 = vpack.c.b16 %v4540_v5, %v4538_v2  ;;  %v1422_v13 = vpack.c.bf16 %v1406_v50, %v1406_v50 }
 0x430   : > { %v4546_v35 = vunpack.c.l.b16 %v1426_v38  ;;  %v1961_v56 = vpop.xlane.xlu2 %1960  ;;  %v2233_v22 = vunpack.c.l.b16 %v1421_v54 }
 0x431   : > { %v1957_v10 = vpop.xlane.xlu1 %1956  ;;  %v1665_v6 = vpop.xlane.xlu0 %1664  ;;  %v2234_v51 = vunpack.c.l.b16 %v1422_v13 }
 0x432   : > { %v2248_v63 = vpack.c.b16 %v4546_v35, %v4542_v42  ;;  %v1975_v18 = vsub.f32 %v4421_v58, %v1957_v10  ;;  %v4556_v58 = vpop.eup %3164 }
 0x433   : > { %v1373_v21 = vpop.f32.mrf.mxu2  ;;  %v3167_v38 = vpop.eup %3166  ;;  %v2246_v50 = vpack.c.b16 %v2234_v51, %v2233_v22 }
 0x434   : > { %v2004_v37 = vmul.f32 1.442695, %v1975_v18  ;;  %v1411_v52 = vmul.f32 %v3163_v15, %v1373_v21  ;;  %v1977_v18 = vsub.f32 %v4417_v24, %v1961_v56 }
 0x435   : > { %v4553_v44 = vpop.f32.mrf.mxu0  ;;  %2313 = vrot.lane.b32.xlu2 %v2302_v16, %s3416_s21 }
 0x436   : > { %3168 = vpow2.f32 %v2004_v37  ;;  %v1427_v45 = vpack.c.bf16 %v1411_v52, %v1411_v52  ;;  %v2008_v52 = vmul.f32 1.442695, %v1977_v18 }
 0x437   : > { %3170 = vrcp.f32 %v1665_v6 }
 0x438   : > { %v1667_v7 = vpop.xlane.xlu2 %1666  ;;  %3172 = vrcp.f32 %v1299_v53  ;;  %v4566_v21 = vunpack.c.l.b16 %v1427_v45 }
 0x439   : > { %v1959_v17 = vpop.xlane.xlu1 %1958  ;;  %v4564_v15 = vpop.xlane.xlu0 %896  ;;  %3174 = vrcp.f32 %v1667_v7 }
 0x43a   : > { %v1976_v34 = vsub.f32 %v4430_v0, %v1959_v17 }
 0x43b   : > { %v1375_v27 = vpop.f32.mrf.mxu2 }
 0x43c   : > { %v4558_v11 = vpop.eup %3168  ;;  %v1412_v14 = vmul.f32 %v3167_v38, %v1375_v27  ;;  %v2006_v29 = vmul.f32 1.442695, %v1976_v34 }
 0x43d   : > { %v1743_v61 = vpop.f32.mrf.mxu0  ;;  %v2048_v10 = vpack.c.bf16 %v4558_v11, %v4556_v58  ;;  %v3171_v53 = vpop.eup %3170 }
 0x43e   : > { %v1428_v16 = vpack.c.bf16 %v1412_v14, %v1412_v14  ;;  %v1781_v24 = vmul.f32 %v3171_v53, %v1743_v61  ;;  %v3173_v56 = vpop.eup %3172 }
 0x43f   : > { %2112 = vmatmul.bf16.gmra.mxu2 %v2048_v10  ;;  %v3175_v17 = vpop.eup %3174 }
 0x440   : > { %v4568_v6 = vunpack.c.l.b16 %v1428_v16  ;;  %2257 = vrot.lane.b32.xlu0 %v2246_v50, %s3418_s6  ;;  %v1301_v0 = vpop.xlane.xlu2 %1300  ;;  %v1797_v38 = vpack.c.bf16 %v1781_v24, %v1781_v24 }
 0x441   : > { %v1271_v37 = vpop.xlane.xlu1 %1270  ;;  %v1671_v22 = vpop.xlane.xlu0 %1670 }
 0x442   : > { %v2249_v13 = vpack.c.b16 %v4568_v6, %v4566_v21  ;;  %3176 = vrcp.f32 %v1271_v37  ;;  %v4573_v18 = vunpack.c.l.b16 %v1797_v38 }
 0x443   : > { %v1378_v54 = vpop.f32.mrf.mxu2  ;;  %3178 = vpow2.f32 %v2006_v29 }
 0x444   : > { %v1413_v7 = vmul.f32 %v3173_v56, %v1378_v54  ;;  %3180 = vrcp.f32 %v1301_v0 }
 0x445   : > { %v1745_v51 = vpop.f32.mrf.mxu0  ;;  %3182 = vpow2.f32 %v2008_v52 }
 0x446   : > { %v1782_v27 = vmul.f32 %v3175_v17, %v1745_v51  ;;  %v1429_v37 = vpack.c.bf16 %v1413_v7, %v1413_v7 }
 0x448   : > { %v1798_v45 = vpack.c.bf16 %v1782_v27, %v1782_v27  ;;  %v1273_v34 = vpop.xlane.xlu2 %1272  ;;  %v3177_v14 = vpop.eup %3176  ;;  %v4583_v27 = vunpack.c.l.b16 %v1429_v37 }
 0x449   : > { %3184 = vrcp.f32 %v1273_v34  ;;  %v1669_v10 = vpop.xlane.xlu1 %1668  ;;  %v3179_v50 = vpop.eup %3178  ;;  %v1399_v0 = vmul.f32 %v3177_v14, %v4434_v3 }
 0x44a   : > { %v4575_v61 = vunpack.c.l.b16 %v1798_v45  ;;  %v3181_v16 = vpop.eup %3180  ;;  %3186 = vrcp.f32 %v1669_v10  ;;  %v2015_v14 = vpop.xlane.xlu0 %2014 }
 0x44b   : > { %v1380_v29 = vpop.f32.mrf.mxu2  ;;  %v4577_v53 = vpop.eup %3182  ;;  %3188 = vrcp.f32 %v1671_v22  ;;  %v1415_v38 = vpack.c.bf16 %v1399_v0, %v1399_v0 }
 0x44c   : > { %v2305_v52 = vpack.c.b16 %v4575_v61, %v4573_v18  ;;  %v1414_v24 = vmul.f32 %v3181_v16, %v1380_v29  ;;  %v2049_v54 = vpack.c.bf16 %v4577_v53, %v3179_v50  ;;  %v4833_v18 = vld [vmem:[#allocation18_spill] sm:$0xff] }
 0x44d   : > { %v1748_v56 = vpop.f32.mrf.mxu0  ;;  %v4593_v22 = vunpack.c.l.b16 %v1415_v38 }
 0x44e   : > { %v1430_v17 = vpack.c.bf16 %v1414_v24, %v1414_v24 }
 0x44f   : > { %v3185_v51 = vpop.eup %3184  ;;  %2117 = vmatmul.bf16.gmra.mxu2 %v2049_v54 }
 0x450   : > { %v1400_v45 = vmul.f32 %v3185_v51, %v4451_v31  ;;  %v4586_v34 = vunpack.c.l.b16 %v1430_v17  ;;  %898 = vadd.xlane.f32.xlu1 %v4165_v59  ;;  %v3187_v3 = vpop.eup %3186 }
 0x451   : > { %v1783_v16 = vmul.f32 %v3187_v3, %v1748_v56  ;;  %v3189_v37 = vpop.eup %3188 }
 0x452   : > { %v1416_v7 = vpack.c.bf16 %v1400_v45, %v1400_v45  ;;  %v2250_v10 = vpack.c.b16 %v4586_v34, %v4583_v27  ;;  %v2019_v38 = vpop.xlane.xlu0 %2018 }
 0x453   : > { %v4591_v29 = vpop.f32.mrf.mxu2  ;;  %v1799_v31 = vpack.c.bf16 %v1783_v16, %v1783_v16 }
 0x454   : > { %v4595_v0 = vunpack.c.l.b16 %v1416_v7 }
 0x455   : > { %v1750_v24 = vpop.f32.mrf.mxu0  ;;  %v4600_v51 = vunpack.c.l.b16 %v1799_v31 }
 0x456   : > { %v1784_v54 = vmul.f32 %v3189_v37, %v1750_v24  ;;  %v2243_v59 = vpack.c.b16 %v4595_v0, %v4593_v22  ;;  %v4829_v37 = vpack.c.b16 %v4322_v48, %v4320_v9  ;;  %v2017_v24 = vpop.xlane.xlu1 %2016 }
 0x457   : > { %3190 = vrcp.f32 %v2017_v24 }
 0x458   : > { %v1800_v17 = vpack.c.bf16 %v1784_v54, %v1784_v54  ;;  %2032 = vadd.xlane.f32.xlu1 %v4518_v49  ;;  %3192 = vrcp.f32 %v2015_v14 }
 0x459   : > { %3194 = vrcp.f32 %v4516_v47 }
 0x45a   : > { %v4602_v45 = vunpack.c.l.b16 %v1800_v17  ;;  %3196 = vrcp.f32 %v4528_v40 }
 0x45b   : > { %v4604_v56 = vpop.f32.mrf.mxu2 }
 0x45c   : > { %v2306_v3 = vpack.c.b16 %v4602_v45, %v4600_v51 }
 0x45e   : > { %2010 = vadd.xlane.f32.xlu2 %v4441_v55  ;;  %v3191_v55 = vpop.eup %3190 }
 0x45f   : > { %v3193_v17 = vpop.eup %3192 }
 0x460   : > { %2034 = vadd.xlane.f32.xlu1 %v4556_v58 }
 0x463   : > { %v2088_v7 = vpop.f32.mrf.mxu2 }
 0x464   : > { %v2254_v16 = vpop.permute.xlu0 %2253  ;;  %v2141_v9 = vmul.f32 %v3193_v17, %v2088_v7 }
 0x465   : > { %v4614_v49 = vsel %vm698_vm0, %v4829_v37, %v2254_v16  ;;  %v1641_v16 = vpop.xlane.xlu2 %1640 }
 0x466   : > { %2038 = vadd.xlane.f32.xlu2 %v3179_v50  ;;  %v2157_v50 = vpack.c.bf16 %v2141_v9, %v2141_v9 }
 0x468   : > { %v2341_v14 = vunpack.c.l.b16 %v2157_v50 }
 0x46a   : > { %2030 = vadd.xlane.f32.xlu0 %v4520_v46  ;;  %v2021_v46 = vpop.xlane.xlu1 %2020 }
 0x46b   : > { %v2090_v31 = vpop.f32.mrf.mxu2  ;;  %3198 = vrcp.f32 %v2021_v46 }
 0x46c   : > { %v2142_v54 = vmul.f32 %v3191_v55, %v2090_v31  ;;  %3200 = vrcp.f32 %v2019_v38 }
 0x46d   : > { %3202 = vrcp.f32 %v1641_v16 }
 0x46e   : > { %v2158_v48 = vpack.c.bf16 %v2142_v54, %v2142_v54 }
 0x472   : > { %2012 = vadd.xlane.f32.xlu0 %v4439_v28  ;;  %v2342_v28 = vunpack.c.l.b16 %v2158_v48 }
 0x473   : > { %v2093_v58 = vpop.f32.mrf.mxu2 }
 0x474   : > { %v2356_v32 = vpack.c.b16 %v2342_v28, %v2341_v14 }
 0x478   : > { %v2025_v5 = vpop.xlane.xlu1 %2024 }
 0x479   : > { %2259 = vrot.lane.b32.xlu1 %v2247_v41, %s3418_s6  ;;  %v3195_v41 = vpop.eup %3194 }
 0x47a   : > { %2036 = vadd.xlane.f32.xlu0 %v4558_v11  ;;  %v3197_v11 = vpop.eup %3196  ;;  %v1780_v2 = vmul.f32 %v3195_v41, %v4553_v44 }
 0x47b   : > { %v2095_v36 = vpop.f32.mrf.mxu2  ;;  %v3199_v7 = vpop.eup %3198  ;;  %v1779_v40 = vmul.f32 %v3197_v11, %v4535_v62 }
 0x47c   : > { %v2144_v47 = vmul.f32 %v3199_v7, %v2095_v36  ;;  %v1796_v31 = vpack.c.bf16 %v1780_v2, %v1780_v2 }
 0x47e   : > { %2315 = vrot.lane.b32.xlu2 %v2303_v57, %s3416_s21  ;;  %v3201_v57 = vpop.eup %3200  ;;  %v2160_v55 = vpack.c.bf16 %v2144_v47, %v2144_v47  ;;  %v2294_v9 = vunpack.c.l.b16 %v1796_v31 }
 0x47f   : > { %v2143_v37 = vmul.f32 %v3201_v57, %v2093_v58  ;;  %v3203_v36 = vpop.eup %3202 }
 0x480   : > { %v2344_v44 = vunpack.c.l.b16 %v2160_v55  ;;  %v1769_v11 = vmul.f32 %v3203_v36, %v4455_v25 }
 0x481   : > { %v2159_v38 = vpack.c.bf16 %v2143_v37, %v2143_v37 }
 0x482   : > { %2040 = vadd.xlane.f32.xlu0 %v4577_v53  ;;  %v1795_v53 = vpack.c.bf16 %v1779_v40, %v1779_v40  ;;  %v1785_v2 = vpack.c.bf16 %v1769_v11, %v1769_v11 }
 0x483   : > { %v2343_v62 = vunpack.c.l.b16 %v2159_v38 }
 0x484   : > { %v2293_v46 = vunpack.c.l.b16 %v1795_v53  ;;  %v4650_v31 = vunpack.c.l.b16 %v1785_v2 }
 0x485   : > { %v2357_v28 = vpack.c.b16 %v2344_v44, %v2343_v62  ;;  %v2901_v62 = vld [vmem:[#allocation7 + $0x38] sm:$0xff] }
 0x486   : > { %2365 = vrot.lane.b32.xlu2 %v2356_v32, %s3417_s26  ;;  %v2304_v50 = vpack.c.b16 %v2294_v9, %v2293_v46  ;;  %2903 = vmatpush.bf16.msra.mxu3 %v2901_v62 }
 0x487   : > { %2509 = vmatpush.bf16.msrb.mxu0 %v2901_v62 }
 0x488   : > { %v2027_v54 = vpop.xlane.xlu2 %2026 }
 0x48a   : > { %v2098_v24 = vpop.f32.mrf.mxu2 }
 0x48e   : > { %2261 = vrot.lane.b32.xlu2 %v2248_v63, %s3418_s6  ;;  %v4830_v63 = vpack.c.b16 %v4345_v60, %v4343_v4 }
 0x48f   : > { %v2023_v17 = vpop.xlane.xlu0 %2022 }
 0x490   : > { %v4637_v48 = vpop.permute.xlu1 %2309  ;;  %v2312_v35 = vpop.permute.xlu2 %2311 }
 0x492   : > { %v2100_v58 = vpop.f32.mrf.mxu2 }
 0x496   : > { %2317 = vrot.lane.b32.xlu2 %v2304_v50, %s3416_s21  ;;  %2367 = vrot.lane.b32.xlu0 %v2357_v28, %s3417_s26 }
 0x497   : > { %v1643_v14 = vpop.xlane.xlu0 %1642 }
 0x498   : > { %3204 = vrcp.f32 %v1643_v14  ;;  %v2256_v42 = vpop.permute.xlu1 %2255 }
 0x499   : > { %v2387_v32 = vsel %vm698_vm0, %v4830_v63, %v2256_v42  ;;  %3206 = vrcp.f32 %v2027_v54 }
 0x49a   : > { %v4646_v41 = vsel %vm2403_vm2, %v2387_v32, %v2312_v35  ;;  %v2103_v7 = vpop.f32.mrf.mxu2  ;;  %v2314_v35 = vpop.permute.xlu2 %2313  ;;  %v2899_v32 = vld [vmem:[#allocation7 + $0x28] sm:$0xff] }
 0x49e   : > { %v3205_v16 = vpop.eup %3204 }
 0x49f   : > { %v1770_v47 = vmul.f32 %v3205_v16, %v4461_v39  ;;  %v2029_v57 = vpop.xlane.xlu0 %2028  ;;  %v3207_v37 = vpop.eup %3206  ;;  %v2898_v16 = vld [vmem:[#allocation7 + $0x20] sm:$0xff] }
 0x4a0   : > { %3208 = vrcp.f32 %v2029_v57  ;;  %v2147_v60 = vmul.f32 %v3207_v37, %v2103_v7  ;;  %v2895_v57 = vld [vmem:[#allocation7 + $0x8] sm:$0xff] }
 0x4a1   : > { %v1786_v40 = vpack.c.bf16 %v1770_v47, %v1770_v47  ;;  %3210 = vrcp.f32 %v2023_v17  ;;  %v2897_v47 = vld [vmem:[#allocation7 + $0x18] sm:$0xff] }
 0x4a2   : > { %v2105_v53 = vpop.f32.mrf.mxu2  ;;  %v2163_v38 = vpack.c.bf16 %v2147_v60, %v2147_v60  ;;  %3212 = vrcp.f32 %v2025_v5  ;;  %v4831_v5 = vpack.c.b16 %v4355_v19, %v4353_v30  ;;  %v2896_v19 = vld [vmem:[#allocation7 + $0x10] sm:$0xff]  ;;  %v2894_v60 = vld [vmem:[#allocation7] sm:$0xff] }
 0x4a3   : > { %v4652_v4 = vunpack.c.l.b16 %v1786_v40  ;;  %900 = vadd.xlane.f32.xlu1 %v4181_v12  ;;  %v2900_v12 = vld [vmem:[#allocation7 + $0x30] sm:$0xff]  ;;  %3214 = vrcp.f32 %v4564_v15 }
 0x4a4   : > { %v2347_v44 = vunpack.c.l.b16 %v2163_v38  ;;  %2904 = vmatpush.bf16.msra.mxu3 %v2900_v12  ;;  %2510 = vmatpush.bf16.msrb.mxu0 %v2900_v12 }
 0x4a5   : > { %v2299_v25 = vpack.c.b16 %v4652_v4, %v4650_v31 }
 0x4a6   : > { %v3209_v55 = vpop.eup %3208 }
 0x4a7   : > { %v2148_v54 = vmul.f32 %v3209_v55, %v2105_v53  ;;  %v3211_v9 = vpop.eup %3210 }
 0x4a8   : > { %v2145_v28 = vmul.f32 %v3211_v9, %v2098_v24  ;;  %v3213_v14 = vpop.eup %3212  ;;  %2905 = vmatpush.bf16.msra.mxu3 %v2899_v32  ;;  %2511 = vmatpush.bf16.msrb.mxu0 %v2899_v32 }
 0x4a9   : > { %v2164_v39 = vpack.c.bf16 %v2148_v54, %v2148_v54  ;;  %v2146_v17 = vmul.f32 %v3213_v14, %v2100_v58  ;;  %v3215_v40 = vpop.eup %3214 }
 0x4aa   : > { %v2161_v36 = vpack.c.bf16 %v2145_v28, %v2145_v28  ;;  %v1039_v37 = vmul.f32 %v3215_v40, %v4393_v23 }
 0x4ab   : > { %v2348_v46 = vunpack.c.l.b16 %v2164_v39  ;;  %v2162_v11 = vpack.c.bf16 %v2146_v17, %v2146_v17 }
 0x4ac   : > { %v2345_v24 = vunpack.c.l.b16 %v2161_v36  ;;  %2906 = vmatpush.bf16.msra.mxu3 %v2898_v16  ;;  %2512 = vmatpush.bf16.msrb.mxu0 %v2898_v16  ;;  %v1055_v53 = vpack.c.bf16 %v1039_v37, %v1039_v37 }
 0x4ad   : > { %v2359_v50 = vpack.c.b16 %v2348_v46, %v2347_v44  ;;  %v2346_v58 = vunpack.c.l.b16 %v2162_v11 }
 0x4ae   : > { %v4670_v54 = vunpack.c.l.b16 %v1055_v53 }
 0x4af   : > { %2371 = vrot.lane.b32.xlu0 %v2359_v50, %s3417_s26  ;;  %v2358_v2 = vpack.c.b16 %v2346_v58, %v2345_v24 }
 0x4b0   : > { %2907 = vmatpush.bf16.msra.mxu3 %v2897_v47  ;;  %2513 = vmatpush.bf16.msrb.mxu0 %v2897_v47 }
 0x4b2   : > { %v2258_v42 = vpop.permute.xlu0 %2257 }
 0x4b3   : > { %v2390_v63 = vsel %vm698_vm0, %v4831_v5, %v2258_v42 }
 0x4b4   : > { %v4663_v7 = vsel %vm2403_vm2, %v2390_v63, %v2314_v35  ;;  %2908 = vmatpush.bf16.msra.mxu3 %v2896_v19  ;;  %2514 = vmatpush.bf16.msrb.mxu0 %v2896_v19 }
 0x4b8   : > { %2909 = vmatpush.bf16.msra.mxu3 %v2895_v57  ;;  %2515 = vmatpush.bf16.msrb.mxu0 %v2895_v57 }
 0x4bc   : > { %2369 = vrot.lane.b32.xlu1 %v2358_v2, %s3417_s26  ;;  %2910 = vmatpush.bf16.msra.mxu3 %v2894_v60 }
 0x4bd   : > { %2516 = vmatpush.bf16.msrb.mxu0 %v2894_v60 }
 0x4bf   : > { %904 = vadd.xlane.f32.xlu2 %v4250_v33  ;;  %v2108_v33 = vpop.f32.mrf.mxu2 }
 0x4c3   : > { %v899_v30 = vpop.xlane.xlu1 %898 }
 0x4c4   : > { %3216 = vrcp.f32 %v899_v30 }
 0x4c7   : > { %v2110_v62 = vpop.f32.mrf.mxu2 }
 0x4ca   : > { %v3217_v55 = vpop.eup %3216 }
 0x4cb   : > { %v1040_v15 = vmul.f32 %v3217_v55, %v4406_v8  ;;  %v2033_v46 = vpop.xlane.xlu1 %2032 }
 0x4cc   : > { %3218 = vrcp.f32 %v2033_v46 }
 0x4cd   : > { %v1056_v38 = vpack.c.bf16 %v1040_v15, %v1040_v15 }
 0x4cf   : > { %v4672_v39 = vunpack.c.l.b16 %v1056_v38  ;;  %v2113_v8 = vpop.f32.mrf.mxu2 }
 0x4d1   : > { %v2011_v9 = vpop.xlane.xlu2 %2010  ;;  %v2208_v44 = vpack.c.b16 %v4672_v39, %v4670_v54 }
 0x4d2   : > { %v3219_v28 = vpop.eup %3218 }
 0x4d3   : > { %v2150_v14 = vmul.f32 %v3219_v28, %v2110_v62  ;;  %v2035_v17 = vpop.xlane.xlu1 %2034 }
 0x4d5   : > { %v2166_v42 = vpack.c.bf16 %v2150_v14, %v2150_v14 }
 0x4d7   : > { %v2350_v11 = vunpack.c.l.b16 %v2166_v42  ;;  %v2115_v2 = vpop.f32.mrf.mxu2 }
 0x4d9   : > { %v2039_v23 = vpop.xlane.xlu2 %2038  ;;  %902 = vadd.xlane.f32.xlu0 %v4185_v1  ;;  %v2407_v1 = vsel %vm2403_vm2, %v4614_v49, %v4637_v48 }
 0x4dd   : > { %v2031_v50 = vpop.xlane.xlu0 %2030 }
 0x4de   : > { %3220 = vrcp.f32 %v2031_v50 }
 0x4df   : > { %3222 = vrcp.f32 %v2011_v9 }
 0x4e1   : > { %v2316_v12 = vpop.permute.xlu2 %2315 }
 0x4e4   : > { %v3221_v36 = vpop.eup %3220 }
 0x4e5   : > { %v2149_v35 = vmul.f32 %v3221_v36, %v2108_v33  ;;  %v2013_v5 = vpop.xlane.xlu0 %2012  ;;  %v3223_v63 = vpop.eup %3222 }
 0x4e6   : > { %3224 = vrcp.f32 %v2013_v5  ;;  %906 = vadd.xlane.f32.xlu1 %v4233_v26  ;;  %v2139_v24 = vmul.f32 %v3223_v63, %v4591_v29  ;;  %v4832_v26 = vpack.c.b16 %v4381_v20, %v4379_v43  ;;  %v2118_v33 = vpop.f32.mrf.mxu2 }
 0x4e7   : > { %v2165_v32 = vpack.c.bf16 %v2149_v35, %v2149_v35  ;;  %3226 = vrcp.f32 %v2035_v17 }
 0x4e8   : > { %v2155_v37 = vpack.c.bf16 %v2139_v24, %v2139_v24  ;;  %v4836_v24 = vld [vmem:[#allocation14_spill] sm:$0xff] }
 0x4e9   : > { %v2349_v16 = vunpack.c.l.b16 %v2165_v32  ;;  %v2366_v58 = vpop.permute.xlu2 %2365 }
 0x4ea   : > { %v2425_v47 = vsel %vm2420_vm3, %v2407_v1, %v2366_v58  ;;  %v2339_v53 = vunpack.c.l.b16 %v2155_v37  ;;  %v4835_v1 = vld [vmem:[#allocation15_spill] sm:$0xff] }
 0x4eb   : > { %2522 = vmatmul.bf16.vlgmr.msra.gmra.mxu3 %v2425_v47  ;;  %v2260_v19 = vpop.permute.xlu1 %2259  ;;  %v2360_v30 = vpack.c.b16 %v2350_v11, %v2349_v16 }
 0x4ec   : > { %v3225_v57 = vpop.eup %3224  ;;  %v2393_v40 = vsel %vm698_vm0, %v4832_v26, %v2260_v19 }
 0x4ed   : > { %v2140_v49 = vmul.f32 %v3225_v57, %v4604_v56  ;;  %v2037_v48 = vpop.xlane.xlu0 %2036  ;;  %2263 = vrot.lane.b32.xlu0 %v2249_v13, %s3418_s6  ;;  %2373 = vrot.lane.b32.xlu2 %v2360_v30, %s3417_s26  ;;  %v2413_v29 = vsel %vm2403_vm2, %v2393_v40, %v2316_v12  ;;  %v3227_v60 = vpop.eup %3226 }
 0x4ee   : > { %3228 = vrcp.f32 %v2037_v48  ;;  %v2151_v43 = vmul.f32 %v3227_v60, %v2113_v8  ;;  %v2120_v8 = vpop.f32.mrf.mxu2 }
 0x4ef   : > { %v2156_v55 = vpack.c.bf16 %v2140_v49, %v2140_v49 }
 0x4f0   : > { %v2167_v56 = vpack.c.bf16 %v2151_v43, %v2151_v43  ;;  %v4838_v43 = vld [vmem:[#allocation16_spill] sm:$0xff] }
 0x4f1   : > { %v2340_v20 = vunpack.c.l.b16 %v2156_v55  ;;  %v4837_v55 = vld [vmem:[#allocation19_spill] sm:$0xff] }
 0x4f2   : > { %v2351_v6 = vunpack.c.l.b16 %v2167_v56 }
 0x4f3   : > { %v2355_v15 = vpack.c.b16 %v2340_v20, %v2339_v53 }
 0x4f4   : > { %v3229_v38 = vpop.eup %3228 }
 0x4f5   : > { %v2152_v9 = vmul.f32 %v3229_v38, %v2115_v2  ;;  %v2041_v46 = vpop.xlane.xlu0 %2040  ;;  %2265 = vrot.lane.b32.xlu0 %v2250_v10, %s3418_s6 }
 0x4f6   : > { %3230 = vrcp.f32 %v2041_v46 }
 0x4f7   : > { %v2168_v21 = vpack.c.bf16 %v2152_v9, %v2152_v9  ;;  %3232 = vrcp.f32 %v2039_v23 }
 0x4f9   : > { %v2352_v13 = vunpack.c.l.b16 %v2168_v21 }
 0x4fb   : > { %v2361_v62 = vpack.c.b16 %v2352_v13, %v2351_v6 }
 0x4fc   : > { %v3231_v50 = vpop.eup %3230 }
 0x4fd   : > { %2375 = vrot.lane.b32.xlu0 %v2361_v62, %s3417_s26  ;;  %v3233_v28 = vpop.eup %3232  ;;  %v2154_v14 = vmul.f32 %v3231_v50, %v2120_v8 }
 0x4fe   : > { %v2153_v12 = vmul.f32 %v3233_v28, %v2118_v33 }
 0x4ff   : > { %2319 = vrot.lane.b32.xlu1 %v2305_v52, %s3416_s21  ;;  %v2170_v27 = vpack.c.bf16 %v2154_v14, %v2154_v14  ;;  %v4834_v52 = vld [vmem:[#allocation17_spill] sm:$0xff] }
 0x500   : > { %v2169_v34 = vpack.c.bf16 %v2153_v12, %v2153_v12 }
 0x501   : > { %v2354_v10 = vunpack.c.l.b16 %v2170_v27 }
 0x502   : > { %v2353_v17 = vunpack.c.l.b16 %v2169_v34  ;;  %v4839_v34 = vld [vmem:[#allocation13_spill] sm:$0xff] }
 0x504   : > { %v2362_v42 = vpack.c.b16 %v2354_v10, %v2353_v17 }
 0x505   : > { %2251 = vrot.lane.b32.xlu0 %v2243_v59, %s3418_s6  ;;  %v2262_v59 = vpop.permute.xlu2 %2261  ;;  %s3356_s6 = scalar_lea.hbm %s4803_s4, 256 }
 0x506   : > { %v2396_v51 = vsel %vm698_vm0, %v2208_v44, %v2262_v59 }
 0x508   : > { %v2368_v23 = vpop.permute.xlu0 %2367 }
 0x509   : > { %v2428_v36 = vsel %vm2420_vm3, %v4646_v41, %v2368_v23 }
 0x50a   : > { %2527 = vmatmul.bf16.gmra.mxu3 %v2428_v36  ;;  %v4840_v36 = vld [vmem:[#allocation12_spill] sm:$0xff] }
 0x50d   : > { %2377 = vrot.lane.b32.xlu0 %v2362_v42, %s3417_s26  ;;  %v2318_v41 = vpop.permute.xlu2 %2317 }
 0x50e   : > { %v2415_v45 = vsel %vm2403_vm2, %v2396_v51, %v2318_v41 }
 0x515   : > { %2307 = vrot.lane.b32.xlu0 %v2299_v25, %s3416_s21 }
 0x516   : > { %878 = vadd.xlane.f32.xlu2 %v4833_v18  ;;  %v901_v61 = vpop.xlane.xlu1 %900 }
 0x521   : > { %v2372_v31 = vpop.permute.xlu0 %2371 }
 0x522   : > { %v2434_v4 = vsel %vm2420_vm3, %v2413_v29, %v2372_v31 }
 0x529   : > { %876 = vadd.xlane.f32.xlu1 %v4834_v52 }
 0x52e   : > { %2321 = vrot.lane.b32.xlu2 %v2306_v3, %s3416_s21  ;;  %v2370_v22 = vpop.permute.xlu1 %2369  ;;  %s3352_s21 = scalar_lea.hbm %s3351_s11, 128 }
 0x52f   : > { %v2431_v0 = vsel %vm2420_vm3, %v4663_v7, %v2370_v22  ;;  %p3353_p4 = scmp.ne.s32.totalorder %s3351_s11, %s3352_s21  ;;  %p3358_p2 = scmp.lt.s32.totalorder %s3356_s6, %s3352_s21 }
 0x530   : > { %2532 = vmatmul.bf16.gmra.mxu3 %v2431_v0 }
 0x531   : > { %p3354_p8 = pnand %p3353_p4, %p3516_p5  ;;  %p3359_p10 = por %p3358_p2, %p3357_p9 }
 0x532   : > { %v905_v25 = vpop.xlane.xlu2 %904 }
 0x533   : > { %p3355_p11 = pneg %p3354_p8 }
 0x535   : > { %p3360_p12 = pnand %p3359_p10, %p3355_p11 }
 0x536   : > { %2363 = vrot.lane.b32.xlu2 %v2355_v15, %s3417_s26 }
 0x540   : > { %2537 = vmatmul.bf16.gmra.mxu3 %v2434_v4 }
 0x547   : > { %v2374_v35 = vpop.permute.xlu2 %2373 }
 0x548   : > { %v2437_v3 = vsel %vm2420_vm3, %v2415_v45, %v2374_v35 }
 0x54c   : > { %v903_v7 = vpop.xlane.xlu0 %902 }
 0x54d   : > { %3234 = vrcp.f32 %v903_v7 }
 0x54e   : > { %3236 = vrcp.f32 %v901_v61 }
 0x550   : > { %2542 = vmatmul.bf16.gmra.mxu3 %v2437_v3 }
 0x553   : > { %v3235_v63 = vpop.eup %3234 }
 0x554   : > { %v3237_v32 = vpop.eup %3236  ;;  %v1042_v11 = vmul.f32 %v3235_v63, %v4835_v1 }
 0x555   : > { %v1041_v16 = vmul.f32 %v3237_v32, %v4836_v24 }
 0x556   : > { %v1058_v58 = vpack.c.bf16 %v1042_v11, %v1042_v11 }
 0x557   : > { %v1057_v39 = vpack.c.bf16 %v1041_v16, %v1041_v16 }
 0x558   : > { %v2200_v2 = vunpack.c.l.b16 %v1058_v58 }
 0x559   : > { %v907_v44 = vpop.xlane.xlu1 %906  ;;  %v2199_v47 = vunpack.c.l.b16 %v1057_v39 }
 0x55a   : > { %3238 = vrcp.f32 %v907_v44 }
 0x55b   : > { %v2209_v30 = vpack.c.b16 %v2200_v2, %v2199_v47  ;;  %3240 = vrcp.f32 %v905_v25 }
 0x55f   : > { %v2264_v5 = vpop.permute.xlu0 %2263 }
 0x560   : > { %v2399_v57 = vsel %vm698_vm0, %v2209_v30, %v2264_v5  ;;  %v3239_v29 = vpop.eup %3238 }
 0x561   : > { %v3241_v60 = vpop.eup %3240  ;;  %v1044_v53 = vmul.f32 %v3239_v29, %v4837_v55 }
 0x562   : > { %v1043_v20 = vmul.f32 %v3241_v60, %v4838_v43 }
 0x563   : > { %v1060_v15 = vpack.c.bf16 %v1044_v53, %v1044_v53 }
 0x564   : > { %v1059_v38 = vpack.c.bf16 %v1043_v20, %v1043_v20 }
 0x565   : > { %v2202_v56 = vunpack.c.l.b16 %v1060_v15 }
 0x566   : > { %v2201_v46 = vunpack.c.l.b16 %v1059_v38 }
 0x567   : > { %v2266_v54 = vpop.permute.xlu0 %2265 }
 0x568   : > { %v2210_v21 = vpack.c.b16 %v2202_v56, %v2201_v46 }
 0x56a   : > { %v2402_v13 = vsel %vm698_vm0, %v2210_v21, %v2266_v54 }
 0x56e   : > { %v2523_v19 = vpop.f32.mrf.mxu3 }
 0x56f   : > { %2560 = vst [vmem:[%s4734_s14 + $0x10] sm:$0xff] %v2523_v19  ;;  %v2376_v40 = vpop.permute.xlu0 %2375 }
 0x571   : > { %v2320_v26 = vpop.permute.xlu1 %2319 }
 0x572   : > { %v2417_v37 = vsel %vm2403_vm2, %v2399_v57, %v2320_v26 }
 0x573   : > { %v2440_v49 = vsel %vm2420_vm3, %v2417_v37, %v2376_v40 }
 0x574   : > { %2547 = vmatmul.bf16.gmra.mxu3 %v2440_v49 }
 0x576   : > { %v2525_v48 = vpop.f32.mrf.mxu3 }
 0x577   : > { %2561 = vst [vmem:[%s4734_s14 + $0x18] sm:$0xff] %v2525_v48  ;;  %v2252_v33 = vpop.permute.xlu0 %2251 }
 0x57f   : > { %v2378_v50 = vpop.permute.xlu0 %2377 }
 0x587   : > { %v2308_v0 = vpop.permute.xlu0 %2307 }
 0x589   : > { %v879_v9 = vpop.xlane.xlu2 %878 }
 0x58a   : > { %3242 = vrcp.f32 %v879_v9 }
 0x58d   : > { %v2528_v6 = vpop.f32.mrf.mxu3 }
 0x58e   : > { %2562 = vst [vmem:[%s4734_s14 + $0x20] sm:$0xff] %v2528_v6 }
 0x590   : > { %v3243_v27 = vpop.eup %3242 }
 0x591   : > { %v2322_v62 = vpop.permute.xlu2 %2321  ;;  %v1030_v10 = vmul.f32 %v3243_v27, %v4839_v34 }
 0x592   : > { %v2419_v28 = vsel %vm2403_vm2, %v2402_v13, %v2322_v62 }
 0x593   : > { %v2443_v8 = vsel %vm2420_vm3, %v2419_v28, %v2378_v50  ;;  %v1046_v17 = vpack.c.bf16 %v1030_v10, %v1030_v10 }
 0x594   : > { %2552 = vmatmul.bf16.gmra.mxu3 %v2443_v8 }
 0x595   : > { %v2530_v14 = vpop.f32.mrf.mxu3  ;;  %v2188_v61 = vunpack.c.l.b16 %v1046_v17 }
 0x596   : > { %2563 = vst [vmem:[%s4734_s14 + $0x28] sm:$0xff] %v2530_v14 }
 0x599   : > { %v2364_v41 = vpop.permute.xlu2 %2363 }
 0x59c   : > { %v877_v12 = vpop.xlane.xlu1 %876 }
 0x59d   : > { %3244 = vrcp.f32 %v877_v12 }
 0x5a3   : > { %v3245_v23 = vpop.eup %3244 }
 0x5a4   : > { %v1029_v42 = vmul.f32 %v3245_v23, %v4840_v36 }
 0x5a6   : > { %v1045_v18 = vpack.c.bf16 %v1029_v42, %v1029_v42 }
 0x5a8   : > { %v2187_v52 = vunpack.c.l.b16 %v1045_v18 }
 0x5aa   : > { %v2203_v22 = vpack.c.b16 %v2188_v61, %v2187_v52 }
 0x5ac   : > { %v2381_v59 = vsel %vm698_vm0, %v2203_v22, %v2252_v33 }
 0x5ad   : > { %v2405_v31 = vsel %vm2403_vm2, %v2381_v59, %v2308_v0 }
 0x5ae   : > { %v2422_v4 = vsel %vm2420_vm3, %v2405_v31, %v2364_v41 }
 0x5af   : > { %2517 = vmatmul.bf16.vlgmr.msrb.gmra.mxu0 %v2422_v4 }
 0x5b3   : > { %v2533_v25 = vpop.f32.mrf.mxu3 }
 0x5b4   : > { %2564 = vst [vmem:[%s4734_s14 + $0x30] sm:$0xff] %v2533_v25 }
 0x5bb   : > { %v2535_v35 = vpop.f32.mrf.mxu3 }
 0x5bc   : > { %2565 = vst [vmem:[%s4734_s14 + $0x38] sm:$0xff] %v2535_v35 }
 0x5c3   : > { %v2538_v51 = vpop.f32.mrf.mxu3 }
 0x5c4   : > { %2566 = vst [vmem:[%s4734_s14 + $0x40] sm:$0xff] %v2538_v51 }
 0x5cb   : > { %v2540_v45 = vpop.f32.mrf.mxu3 }
 0x5cc   : > { %2567 = vst [vmem:[%s4734_s14 + $0x48] sm:$0xff] %v2540_v45 }
 0x5d3   : > { %v2543_v3 = vpop.f32.mrf.mxu3 }
 0x5d4   : > { %2568 = vst [vmem:[%s4734_s14 + $0x50] sm:$0xff] %v2543_v3 }
 0x5db   : > { %v2545_v7 = vpop.f32.mrf.mxu3 }
 0x5dc   : > { %2569 = vst [vmem:[%s4734_s14 + $0x58] sm:$0xff] %v2545_v7 }
 0x5f7   : > { %v2548_v5 = vpop.f32.mrf.mxu3 }
 0x5f8   : > { %2570 = vst [vmem:[%s4734_s14 + $0x60] sm:$0xff] %v2548_v5 }
 0x5ff   : > { %v2550_v63 = vpop.f32.mrf.mxu3 }
 0x600   : > { %2571 = vst [vmem:[%s4734_s14 + $0x68] sm:$0xff] %v2550_v63 }
 0x617   : > { %v2553_v32 = vpop.f32.mrf.mxu3 }
 0x618   : > { %2572 = vst [vmem:[%s4734_s14 + $0x70] sm:$0xff] %v2553_v32 }
 0x61f   : > { %v2555_v1 = vpop.f32.mrf.mxu3 }
 0x620   : > { %2573 = vst [vmem:[%s4734_s14 + $0x78] sm:$0xff] %v2555_v1 }
 0x62c   : > { %v2518_v11 = vpop.f32.mrf.mxu0 }
 0x62d   : > { %2558 = vst [vmem:[%s4734_s14] sm:$0xff] %v2518_v11 }
 0x634   : > { %v2520_v24 = vpop.f32.mrf.mxu0 }
 0x635   : > { %2559 = vst [vmem:[%s4734_s14 + $0x8] sm:$0xff] %v2520_v24 }
 0x636   : > { %3363 = shalt.err (!%p3360_p12)
}
 0x637   : > { %s3420_s30 = smov 128   ;;  %s3421_s9 = smov 8  }
 0x638   : > { %2921 = dma.vmem_to_hbm [thread:$0]  (%p3516_p5), %s2588_s29, 2048, %s2590_s5, %s2575_s10, %s3420_s30, %s3420_s30, %s3421_s9  }
 0x639 PF: > { %s2604_s13 = sand.u32 1, %s3394_s15   ;;  %p4841_p13 = scmp.ge.s32.totalorder %s3406_s18, 2 }
 0x63a   : > { %s2605_s14 = scalar_lea.sflag [#allocation4], %s2604_s13 }
 0x63b   : > { %p2935_p0 = pnand %p4841_p13, %p3482_p6 }
 0x63d   : > { %p2936_p3 = pneg %p2935_p0 }
 0x63f   : > { %3389 = dma.done.wait (%p2936_p3), %s2605_s14, 2048  }
 0x640   : > { %3391 = vsyncadd (%p2936_p3), %s2605_s14, 4294965248  ;;  %p18_p7 = scmp.ge.s32.totalorder %s3503_s12, 4   ;;  %s4842_s15 = smov %s3398_s16 }
 0x641   : > { %s4843_s16 = smov %s3402_s17  ;;  %s4844_s17 = smov %s3512_s20 }
 0x642   : > { %s4845_s18 = smov %s3503_s12  ;;  %20 = sbr.rel (!%p18_p7) target bundleno = 6 (0x6), region = 92 }
 0x647   :  { %2611 = vsyncpa [#allocation3], 1 }
 0x648   :  { %2613 = vsyncpa [#allocation3 + $0x1], 1 }
 0x649   :  { %2614 = vsyncpa [#allocation6], 1 }
 0x64a   :  { %2615 = vsyncpa [#allocation4], 1 }
 0x64b   :  { %2617 = vsyncpa [#allocation4 + $0x1], 1 }

</bundles_post_ra>
